<compile_context>
chip_gen: v7x
topology: tpu7x:2x2x1
jax: 0.10.0
libtpu: 0.0.40
codegen_flags: <defaults>
</compile_context>

<pallas_src>
import jax
import jax.numpy as jnp
from jax import lax
from jax.experimental import pallas as pl
from jax.experimental.pallas import tpu as pltpu


# Block-sparsity of the DLT system: unknowns [h00,h01,h02 | h10,h11,h12 | h20,h21].
# Columns 0-2 are nonzero only in the 4 "u" rows (0-3), columns 3-5 only in the
# 4 "d" rows (4-7), columns 6-8 are dense.  During Gauss-Jordan steps 0-2 the
# pivots live in rows 0-3 and columns 3-5 are provably untouched, so they are
# skipped (symmetrically, steps 3-5 pivot in rows 4-7 and only touch the bottom
# half).  Columns <= k are never read again, so only these columns need updates:
_COLS_TO_UPDATE = {
    0: (1, 2, 6, 7, 8),
    1: (2, 6, 7, 8),
    2: (6, 7, 8),
    3: (4, 5, 6, 7, 8),
    4: (5, 6, 7, 8),
    5: (6, 7, 8),
    6: (7, 8),
    7: (8,),
}


def _dlt_axb_kernel(pts_ref, h_ref):
    pts = pts_ref[...]                       # (16, T) float32
    T = pts.shape[1]
    sx = pts[0:4, :]                         # (4, T)
    sy = pts[4:8, :]
    dx = pts[8:12, :]
    dy = pts[12:16, :]
    one4 = jnp.ones_like(sx)
    zero4 = jnp.zeros_like(sx)

    def stack(u, d):
        # rows 0..3: "u" equations, rows 4..7: "d" equations -> (8, T)
        return jnp.concatenate([u, d], axis=0)

    # Augmented system columns [A | b]; each column is (8, T): 8 equations x T lanes.
    #   "u" rows: sx*h00 + sy*h01 + h02                     - dx*sx*h20 - dx*sy*h21 = dx
    #   "d" rows:                    sx*h10 + sy*h11 + h12  - dy*sx*h20 - dy*sy*h21 = dy
    cols = [
        stack(sx, zero4),            # 0: h00
        stack(sy, zero4),            # 1: h01
        stack(one4, zero4),          # 2: h02
        stack(zero4, sx),            # 3: h10
        stack(zero4, sy),            # 4: h11
        stack(zero4, one4),          # 5: h12
        stack(-dx * sx, -dy * sx),   # 6: h20
        stack(-dx * sy, -dy * sy),   # 7: h21
        stack(dx, dy),               # 8: b
    ]

    row_idx = lax.broadcasted_iota(jnp.int32, (8, T), 0)    # per-element row index
    unused = jnp.ones((8, T), jnp.bool_)                    # rows not yet used as pivots

    piv_masks = []
    inv_pivs = []

    # Gauss-Jordan with per-lane partial pivoting and pivot TRACKING (no physical
    # row swaps), statically unrolled.  The pivot row is left unnormalized; the
    # per-step 1/pivot is kept and applied once during the final unscramble.
    for k in range(8):
        col_k = cols[k]
        cand = jnp.where(unused, jnp.abs(col_k), -1.0)       # exclude used rows
        m = jnp.max(cand, axis=0, keepdims=True)             # (1, T) per-lane max |col|
        p = jnp.min(jnp.where(cand == m, row_idx, 127),
                    axis=0, keepdims=True)                   # (1, T) pivot row (tie: lowest)
        piv_mask = row_idx == p                              # (8, T)
        unused = jnp.logical_and(unused, jnp.logical_not(piv_mask))

        piv_val = jnp.sum(jnp.where(piv_mask, col_k, 0.0),
                          axis=0, keepdims=True)             # (1, T) signed pivot element
        inv0 = pl.reciprocal(piv_val, approx=True)           # EUP slot (cheap)
        inv_piv = inv0 * (2.0 - piv_val * inv0)              # one Newton step -> f32 accurate
        factor = jnp.where(piv_mask, 0.0, col_k)             # pivot row untouched this step

        for j in _COLS_TO_UPDATE[k]:
            cj = cols[j]
            piv_row_j = jnp.sum(jnp.where(piv_mask, cj, 0.0),
                                axis=0, keepdims=True)       # (1, T)
            cols[j] = cj - factor * (piv_row_j * inv_piv)    # eliminate column k

        piv_masks.append(piv_mask)
        inv_pivs.append(inv_piv)

    # Unscramble: unknown k lives in the pivot row of step k (scaled by 1/pivot).
    b_final = cols[8]
    rows = [
        jnp.sum(jnp.where(piv_masks[k], b_final, 0.0), axis=0, keepdims=True)
        * inv_pivs[k]
        for k in range(8)
    ]
    h_ref[...] = jnp.concatenate(rows, axis=0)               # (8, T): h00..h21


def _round_up(x, m):
    return -(-x // m) * m


def dlt_axb(src_pt, dst_pt, tile_b=None):
    """Pallas DLT forward (method='Axb'). Returns (B, 3, 3) homographies."""
    B, N, two = src_pt.shape
    assert two == 2 and N == 4, "'Axb' requires exactly 4 point correspondences"
    src = src_pt.astype(jnp.float32)
    dst = dst_pt.astype(jnp.float32)

    # Lane-dense SoA slab: (16, B) = [sx(4 rows), sy(4), dx(4), dy(4)]
    slab = jnp.concatenate(
        [src[:, :, 0].T, src[:, :, 1].T, dst[:, :, 0].T, dst[:, :, 1].T], axis=0)

    if tile_b is None:
        b_ceil = _round_up(B, 128)
        if b_ceil <= 128:
            tile_b = 128                 # small batches: a single 128-lane tile
        else:
            # >= 2 tiles so the 'parallel' grid axis can span both TensorCores
            # on v7x; cap the per-step working set at 256 lanes (vreg pressure
            # of the 9 fully-unrolled live columns).
            tile_b = min(256, _round_up(-(-b_ceil // 2), 128))
    num_tiles = -(-B // tile_b)
    b_pad = num_tiles * tile_b
    if b_pad != B:
        # Replicate the last batch column so padded lanes stay non-degenerate.
        slab = jnp.pad(slab, ((0, 0), (0, b_pad - B)), mode="edge")

    # TODO(synk): for very large B, use a bigger block (e.g. (16, 2048)) with an
    #             in-kernel 256-lane slice loop to amortize per-grid-step overhead.
    out = pl.pallas_call(
        _dlt_axb_kernel,
        out_shape=jax.ShapeDtypeStruct((8, b_pad), jnp.float32),
        grid=(num_tiles,),
        in_specs=[pl.BlockSpec((16, tile_b), lambda b: (0, b))],
        out_specs=pl.BlockSpec((8, tile_b), lambda b: (0, b)),
        compiler_params=pltpu.CompilerParams(dimension_semantics=("parallel",)),
    )(slab)

    x = out[:, :B].T                                         # (B, 8): h00..h21
    return jnp.concatenate([x, jnp.ones((B, 1), x.dtype)], axis=1).reshape(B, 3, 3)


def dlt_axb_ref(src_pt, dst_pt):
    """Pure-JAX reference mirroring the PyTorch forward (method='Axb')."""
    B, N, _ = src_pt.shape
    xy1 = jnp.concatenate([src_pt, jnp.ones((B, N, 1), src_pt.dtype)], axis=-1)
    zeros3 = jnp.zeros((B, N, 3), src_pt.dtype)
    xyu = jnp.concatenate([xy1, zeros3], axis=-1)
    xyd = jnp.concatenate([zeros3, xy1], axis=-1)
    M1 = jnp.concatenate([xyu, xyd], axis=-1).reshape(B, -1, 6)
    M2 = jnp.matmul(dst_pt.reshape(-1, 2, 1),
                    src_pt.reshape(-1, 1, 2)).reshape(B, -1, 2)
    M3 = dst_pt.reshape(B, -1, 1)
    A = jnp.concatenate([M1, -M2], axis=-1)
    x = jnp.linalg.solve(A, M3).reshape(B, 8)
    return jnp.concatenate([x, jnp.ones((B, 1), x.dtype)], axis=1).reshape(B, 3, 3)


if __name__ == "__main__":
    key = jax.random.PRNGKey(0)
    corners = jnp.array([[0.0, 0.0], [1.0, 0.0], [1.0, 1.0], [0.0, 1.0]],
                        dtype=jnp.float32)

    # Small case (batch=2), matching the module's typical usage.
    k1, k2 = jax.random.split(key)
    B, N = 2, 4
    src_pt = corners[None] + 0.05 * jax.random.normal(k1, (B, N, 2), jnp.float32)
    dst_pt = corners[None] + 0.05 * jax.random.normal(k2, (B, N, 2), jnp.float32)

    H = dlt_axb(src_pt, dst_pt)
    jax.block_until_ready(H)
    H_ref = dlt_axb_ref(src_pt, dst_pt)
    assert H.shape == (B, 3, 3)
    assert jnp.allclose(H, H_ref, rtol=1e-3, atol=2e-3), (H, H_ref)

    # Multi-tile case to exercise the batched grid (2 tiles of 256 lanes,
    # spanning both TensorCores on v7x).
    k3, k4 = jax.random.split(k2)
    B2 = 260
    src2 = corners[None] + 0.05 * jax.random.normal(k3, (B2, N, 2), jnp.float32)
    dst2 = corners[None] + 0.05 * jax.random.normal(k4, (B2, N, 2), jnp.float32)
    H2 = dlt_axb(src2, dst2)
    jax.block_until_ready(H2)
    H2_ref = dlt_axb_ref(src2, dst2)
    assert H2.shape == (B2, 3, 3)
    assert jnp.allclose(H2, H2_ref, rtol=1e-3, atol=2e-3)

    print("KERNEL_OK")
</pallas_src>

<mosaic_0001>
module attributes {stable_mosaic.version = 11 : i64} {
  func.func @_dlt_axb_kernel(%arg0: i32, %arg1: memref<16x128xf32, #tpu.memory_space<vmem>>, %arg2: memref<8x128xf32, #tpu.memory_space<vmem>>) attributes {dimension_semantics = [#tpu.dimension_semantics<parallel>], iteration_bounds = array<i64: 1>, scalar_prefetch = 0 : i64, scratch_operands = 0 : i64, tpu.core_type = #tpu.core_type<tc>, window_params = [{transform_indices = @transform_0, window_bounds = array<i64: 16, 128>}, {transform_indices = @transform_1, window_bounds = array<i64: 8, 128>}]} {
    %c0 = arith.constant 0 : index
    %c0_0 = arith.constant 0 : index
    %0 = vector.load %arg1[%c0, %c0_0] : memref<16x128xf32, #tpu.memory_space<vmem>>, vector<16x128xf32>
    %1 = vector.extract_strided_slice %0 {offsets = [0, 0], sizes = [4, 128], strides = [1, 1]} : vector<16x128xf32> to vector<4x128xf32>
    %2 = vector.extract_strided_slice %0 {offsets = [4, 0], sizes = [4, 128], strides = [1, 1]} : vector<16x128xf32> to vector<4x128xf32>
    %3 = vector.extract_strided_slice %0 {offsets = [8, 0], sizes = [4, 128], strides = [1, 1]} : vector<16x128xf32> to vector<4x128xf32>
    %4 = vector.extract_strided_slice %0 {offsets = [12, 0], sizes = [4, 128], strides = [1, 1]} : vector<16x128xf32> to vector<4x128xf32>
    %cst = arith.constant 1.000000e+00 : f32
    %5 = vector.broadcast %cst : f32 to vector<4x128xf32>
    %cst_1 = arith.constant 0.000000e+00 : f32
    %6 = vector.broadcast %cst_1 : f32 to vector<4x128xf32>
    %7 = tpu.concatenate %1, %6 in 0 : vector<4x128xf32>, vector<4x128xf32> -> vector<8x128xf32>
    %8 = tpu.concatenate %2, %6 in 0 : vector<4x128xf32>, vector<4x128xf32> -> vector<8x128xf32>
    %9 = tpu.concatenate %5, %6 in 0 : vector<4x128xf32>, vector<4x128xf32> -> vector<8x128xf32>
    %10 = tpu.concatenate %6, %1 in 0 : vector<4x128xf32>, vector<4x128xf32> -> vector<8x128xf32>
    %11 = tpu.concatenate %6, %2 in 0 : vector<4x128xf32>, vector<4x128xf32> -> vector<8x128xf32>
    %12 = tpu.concatenate %6, %5 in 0 : vector<4x128xf32>, vector<4x128xf32> -> vector<8x128xf32>
    %cst_2 = arith.constant 0.000000e+00 : f32
    %13 = vector.broadcast %cst_2 : f32 to vector<4x128xf32>
    %14 = arith.subf %13, %3 : vector<4x128xf32>
    %15 = arith.mulf %14, %1 : vector<4x128xf32>
    %cst_3 = arith.constant 0.000000e+00 : f32
    %16 = vector.broadcast %cst_3 : f32 to vector<4x128xf32>
    %17 = arith.subf %16, %4 : vector<4x128xf32>
    %18 = arith.mulf %17, %1 : vector<4x128xf32>
    %19 = tpu.concatenate %15, %18 in 0 : vector<4x128xf32>, vector<4x128xf32> -> vector<8x128xf32>
    %cst_4 = arith.constant 0.000000e+00 : f32
    %20 = vector.broadcast %cst_4 : f32 to vector<4x128xf32>
    %21 = arith.subf %20, %3 : vector<4x128xf32>
    %22 = arith.mulf %21, %2 : vector<4x128xf32>
    %cst_5 = arith.constant 0.000000e+00 : f32
    %23 = vector.broadcast %cst_5 : f32 to vector<4x128xf32>
    %24 = arith.subf %23, %4 : vector<4x128xf32>
    %25 = arith.mulf %24, %2 : vector<4x128xf32>
    %26 = tpu.concatenate %22, %25 in 0 : vector<4x128xf32>, vector<4x128xf32> -> vector<8x128xf32>
    %27 = tpu.concatenate %3, %4 in 0 : vector<4x128xf32>, vector<4x128xf32> -> vector<8x128xf32>
    %28 = tpu.iota {dimensions = array<i32: 0>} : vector<8x128xi32>
    %true = arith.constant true
    %29 = vector.broadcast %true : i1 to vector<8x128xi1>
    %30 = math.absf %7 : vector<8x128xf32>
    %cst_6 = arith.constant -1.000000e+00 : f32
    %31 = vector.broadcast %cst_6 : f32 to vector<8x128xf32>
    %32 = arith.select %29, %30, %31 : vector<8x128xi1>, vector<8x128xf32>
    %cst_7 = arith.constant dense<0xFF800000> : vector<128xf32>
    %33 = vector.multi_reduction <maximumf>, %32, %cst_7 [0] : vector<8x128xf32> to vector<128xf32>
    %34 = vector.shape_cast %33 : vector<128xf32> to vector<1x128xf32>
    %35 = vector.broadcast %34 : vector<1x128xf32> to vector<8x128xf32>
    %36 = arith.cmpf oeq, %32, %35 : vector<8x128xf32>
    %c127_i32 = arith.constant 127 : i32
    %37 = vector.broadcast %c127_i32 : i32 to vector<8x128xi32>
    %38 = arith.select %36, %28, %37 : vector<8x128xi1>, vector<8x128xi32>
    %cst_8 = arith.constant dense<2147483647> : vector<128xi32>
    %39 = vector.multi_reduction <minsi>, %38, %cst_8 [0] : vector<8x128xi32> to vector<128xi32>
    %40 = vector.shape_cast %39 : vector<128xi32> to vector<1x128xi32>
    %41 = vector.broadcast %40 : vector<1x128xi32> to vector<8x128xi32>
    %42 = arith.cmpi eq, %28, %41 : vector<8x128xi32>
    %cst_9 = arith.constant dense<true> : vector<8x128xi1>
    %43 = arith.xori %42, %cst_9 : vector<8x128xi1>
    %44 = arith.andi %29, %43 : vector<8x128xi1>
    %cst_10 = arith.constant 0.000000e+00 : f32
    %45 = vector.broadcast %cst_10 : f32 to vector<8x128xf32>
    %46 = arith.select %42, %7, %45 : vector<8x128xi1>, vector<8x128xf32>
    %cst_11 = arith.constant dense<0.000000e+00> : vector<128xf32>
    %47 = vector.multi_reduction <add>, %46, %cst_11 [0] : vector<8x128xf32> to vector<128xf32>
    %48 = vector.shape_cast %47 : vector<128xf32> to vector<1x128xf32>
    %49 = tpu.reciprocal %48 {approx = true} : vector<1x128xf32> -> vector<1x128xf32>
    %50 = arith.mulf %48, %49 : vector<1x128xf32>
    %cst_12 = arith.constant 2.000000e+00 : f32
    %51 = vector.broadcast %cst_12 : f32 to vector<1x128xf32>
    %52 = arith.subf %51, %50 : vector<1x128xf32>
    %53 = arith.mulf %49, %52 : vector<1x128xf32>
    %cst_13 = arith.constant 0.000000e+00 : f32
    %54 = vector.broadcast %cst_13 : f32 to vector<8x128xf32>
    %55 = arith.select %42, %54, %7 : vector<8x128xi1>, vector<8x128xf32>
    %cst_14 = arith.constant 0.000000e+00 : f32
    %56 = vector.broadcast %cst_14 : f32 to vector<8x128xf32>
    %57 = arith.select %42, %8, %56 : vector<8x128xi1>, vector<8x128xf32>
    %cst_15 = arith.constant dense<0.000000e+00> : vector<128xf32>
    %58 = vector.multi_reduction <add>, %57, %cst_15 [0] : vector<8x128xf32> to vector<128xf32>
    %59 = vector.shape_cast %58 : vector<128xf32> to vector<1x128xf32>
    %60 = arith.mulf %59, %53 : vector<1x128xf32>
    %61 = vector.broadcast %60 : vector<1x128xf32> to vector<8x128xf32>
    %62 = arith.mulf %55, %61 : vector<8x128xf32>
    %63 = arith.subf %8, %62 : vector<8x128xf32>
    %cst_16 = arith.constant 0.000000e+00 : f32
    %64 = vector.broadcast %cst_16 : f32 to vector<8x128xf32>
    %65 = arith.select %42, %9, %64 : vector<8x128xi1>, vector<8x128xf32>
    %cst_17 = arith.constant dense<0.000000e+00> : vector<128xf32>
    %66 = vector.multi_reduction <add>, %65, %cst_17 [0] : vector<8x128xf32> to vector<128xf32>
    %67 = vector.shape_cast %66 : vector<128xf32> to vector<1x128xf32>
    %68 = arith.mulf %67, %53 : vector<1x128xf32>
    %69 = vector.broadcast %68 : vector<1x128xf32> to vector<8x128xf32>
    %70 = arith.mulf %55, %69 : vector<8x128xf32>
    %71 = arith.subf %9, %70 : vector<8x128xf32>
    %cst_18 = arith.constant 0.000000e+00 : f32
    %72 = vector.broadcast %cst_18 : f32 to vector<8x128xf32>
    %73 = arith.select %42, %19, %72 : vector<8x128xi1>, vector<8x128xf32>
    %cst_19 = arith.constant dense<0.000000e+00> : vector<128xf32>
    %74 = vector.multi_reduction <add>, %73, %cst_19 [0] : vector<8x128xf32> to vector<128xf32>
    %75 = vector.shape_cast %74 : vector<128xf32> to vector<1x128xf32>
    %76 = arith.mulf %75, %53 : vector<1x128xf32>
    %77 = vector.broadcast %76 : vector<1x128xf32> to vector<8x128xf32>
    %78 = arith.mulf %55, %77 : vector<8x128xf32>
    %79 = arith.subf %19, %78 : vector<8x128xf32>
    %cst_20 = arith.constant 0.000000e+00 : f32
    %80 = vector.broadcast %cst_20 : f32 to vector<8x128xf32>
    %81 = arith.select %42, %26, %80 : vector<8x128xi1>, vector<8x128xf32>
    %cst_21 = arith.constant dense<0.000000e+00> : vector<128xf32>
    %82 = vector.multi_reduction <add>, %81, %cst_21 [0] : vector<8x128xf32> to vector<128xf32>
    %83 = vector.shape_cast %82 : vector<128xf32> to vector<1x128xf32>
    %84 = arith.mulf %83, %53 : vector<1x128xf32>
    %85 = vector.broadcast %84 : vector<1x128xf32> to vector<8x128xf32>
    %86 = arith.mulf %55, %85 : vector<8x128xf32>
    %87 = arith.subf %26, %86 : vector<8x128xf32>
    %cst_22 = arith.constant 0.000000e+00 : f32
    %88 = vector.broadcast %cst_22 : f32 to vector<8x128xf32>
    %89 = arith.select %42, %27, %88 : vector<8x128xi1>, vector<8x128xf32>
    %cst_23 = arith.constant dense<0.000000e+00> : vector<128xf32>
    %90 = vector.multi_reduction <add>, %89, %cst_23 [0] : vector<8x128xf32> to vector<128xf32>
    %91 = vector.shape_cast %90 : vector<128xf32> to vector<1x128xf32>
    %92 = arith.mulf %91, %53 : vector<1x128xf32>
    %93 = vector.broadcast %92 : vector<1x128xf32> to vector<8x128xf32>
    %94 = arith.mulf %55, %93 : vector<8x128xf32>
    %95 = arith.subf %27, %94 : vector<8x128xf32>
    %96 = math.absf %63 : vector<8x128xf32>
    %cst_24 = arith.constant -1.000000e+00 : f32
    %97 = vector.broadcast %cst_24 : f32 to vector<8x128xf32>
    %98 = arith.select %44, %96, %97 : vector<8x128xi1>, vector<8x128xf32>
    %cst_25 = arith.constant dense<0xFF800000> : vector<128xf32>
    %99 = vector.multi_reduction <maximumf>, %98, %cst_25 [0] : vector<8x128xf32> to vector<128xf32>
    %100 = vector.shape_cast %99 : vector<128xf32> to vector<1x128xf32>
    %101 = vector.broadcast %100 : vector<1x128xf32> to vector<8x128xf32>
    %102 = arith.cmpf oeq, %98, %101 : vector<8x128xf32>
    %c127_i32_26 = arith.constant 127 : i32
    %103 = vector.broadcast %c127_i32_26 : i32 to vector<8x128xi32>
    %104 = arith.select %102, %28, %103 : vector<8x128xi1>, vector<8x128xi32>
    %cst_27 = arith.constant dense<2147483647> : vector<128xi32>
    %105 = vector.multi_reduction <minsi>, %104, %cst_27 [0] : vector<8x128xi32> to vector<128xi32>
    %106 = vector.shape_cast %105 : vector<128xi32> to vector<1x128xi32>
    %107 = vector.broadcast %106 : vector<1x128xi32> to vector<8x128xi32>
    %108 = arith.cmpi eq, %28, %107 : vector<8x128xi32>
    %cst_28 = arith.constant dense<true> : vector<8x128xi1>
    %109 = arith.xori %108, %cst_28 : vector<8x128xi1>
    %110 = arith.andi %44, %109 : vector<8x128xi1>
    %cst_29 = arith.constant 0.000000e+00 : f32
    %111 = vector.broadcast %cst_29 : f32 to vector<8x128xf32>
    %112 = arith.select %108, %63, %111 : vector<8x128xi1>, vector<8x128xf32>
    %cst_30 = arith.constant dense<0.000000e+00> : vector<128xf32>
    %113 = vector.multi_reduction <add>, %112, %cst_30 [0] : vector<8x128xf32> to vector<128xf32>
    %114 = vector.shape_cast %113 : vector<128xf32> to vector<1x128xf32>
    %115 = tpu.reciprocal %114 {approx = true} : vector<1x128xf32> -> vector<1x128xf32>
    %116 = arith.mulf %114, %115 : vector<1x128xf32>
    %cst_31 = arith.constant 2.000000e+00 : f32
    %117 = vector.broadcast %cst_31 : f32 to vector<1x128xf32>
    %118 = arith.subf %117, %116 : vector<1x128xf32>
    %119 = arith.mulf %115, %118 : vector<1x128xf32>
    %cst_32 = arith.constant 0.000000e+00 : f32
    %120 = vector.broadcast %cst_32 : f32 to vector<8x128xf32>
    %121 = arith.select %108, %120, %63 : vector<8x128xi1>, vector<8x128xf32>
    %cst_33 = arith.constant 0.000000e+00 : f32
    %122 = vector.broadcast %cst_33 : f32 to vector<8x128xf32>
    %123 = arith.select %108, %71, %122 : vector<8x128xi1>, vector<8x128xf32>
    %cst_34 = arith.constant dense<0.000000e+00> : vector<128xf32>
    %124 = vector.multi_reduction <add>, %123, %cst_34 [0] : vector<8x128xf32> to vector<128xf32>
    %125 = vector.shape_cast %124 : vector<128xf32> to vector<1x128xf32>
    %126 = arith.mulf %125, %119 : vector<1x128xf32>
    %127 = vector.broadcast %126 : vector<1x128xf32> to vector<8x128xf32>
    %128 = arith.mulf %121, %127 : vector<8x128xf32>
    %129 = arith.subf %71, %128 : vector<8x128xf32>
    %cst_35 = arith.constant 0.000000e+00 : f32
    %130 = vector.broadcast %cst_35 : f32 to vector<8x128xf32>
    %131 = arith.select %108, %79, %130 : vector<8x128xi1>, vector<8x128xf32>
    %cst_36 = arith.constant dense<0.000000e+00> : vector<128xf32>
    %132 = vector.multi_reduction <add>, %131, %cst_36 [0] : vector<8x128xf32> to vector<128xf32>
    %133 = vector.shape_cast %132 : vector<128xf32> to vector<1x128xf32>
    %134 = arith.mulf %133, %119 : vector<1x128xf32>
    %135 = vector.broadcast %134 : vector<1x128xf32> to vector<8x128xf32>
    %136 = arith.mulf %121, %135 : vector<8x128xf32>
    %137 = arith.subf %79, %136 : vector<8x128xf32>
    %cst_37 = arith.constant 0.000000e+00 : f32
    %138 = vector.broadcast %cst_37 : f32 to vector<8x128xf32>
    %139 = arith.select %108, %87, %138 : vector<8x128xi1>, vector<8x128xf32>
    %cst_38 = arith.constant dense<0.000000e+00> : vector<128xf32>
    %140 = vector.multi_reduction <add>, %139, %cst_38 [0] : vector<8x128xf32> to vector<128xf32>
    %141 = vector.shape_cast %140 : vector<128xf32> to vector<1x128xf32>
    %142 = arith.mulf %141, %119 : vector<1x128xf32>
    %143 = vector.broadcast %142 : vector<1x128xf32> to vector<8x128xf32>
    %144 = arith.mulf %121, %143 : vector<8x128xf32>
    %145 = arith.subf %87, %144 : vector<8x128xf32>
    %cst_39 = arith.constant 0.000000e+00 : f32
    %146 = vector.broadcast %cst_39 : f32 to vector<8x128xf32>
    %147 = arith.select %108, %95, %146 : vector<8x128xi1>, vector<8x128xf32>
    %cst_40 = arith.constant dense<0.000000e+00> : vector<128xf32>
    %148 = vector.multi_reduction <add>, %147, %cst_40 [0] : vector<8x128xf32> to vector<128xf32>
    %149 = vector.shape_cast %148 : vector<128xf32> to vector<1x128xf32>
    %150 = arith.mulf %149, %119 : vector<1x128xf32>
    %151 = vector.broadcast %150 : vector<1x128xf32> to vector<8x128xf32>
    %152 = arith.mulf %121, %151 : vector<8x128xf32>
    %153 = arith.subf %95, %152 : vector<8x128xf32>
    %154 = math.absf %129 : vector<8x128xf32>
    %cst_41 = arith.constant -1.000000e+00 : f32
    %155 = vector.broadcast %cst_41 : f32 to vector<8x128xf32>
    %156 = arith.select %110, %154, %155 : vector<8x128xi1>, vector<8x128xf32>
    %cst_42 = arith.constant dense<0xFF800000> : vector<128xf32>
    %157 = vector.multi_reduction <maximumf>, %156, %cst_42 [0] : vector<8x128xf32> to vector<128xf32>
    %158 = vector.shape_cast %157 : vector<128xf32> to vector<1x128xf32>
    %159 = vector.broadcast %158 : vector<1x128xf32> to vector<8x128xf32>
    %160 = arith.cmpf oeq, %156, %159 : vector<8x128xf32>
    %c127_i32_43 = arith.constant 127 : i32
    %161 = vector.broadcast %c127_i32_43 : i32 to vector<8x128xi32>
    %162 = arith.select %160, %28, %161 : vector<8x128xi1>, vector<8x128xi32>
    %cst_44 = arith.constant dense<2147483647> : vector<128xi32>
    %163 = vector.multi_reduction <minsi>, %162, %cst_44 [0] : vector<8x128xi32> to vector<128xi32>
    %164 = vector.shape_cast %163 : vector<128xi32> to vector<1x128xi32>
    %165 = vector.broadcast %164 : vector<1x128xi32> to vector<8x128xi32>
    %166 = arith.cmpi eq, %28, %165 : vector<8x128xi32>
    %cst_45 = arith.constant dense<true> : vector<8x128xi1>
    %167 = arith.xori %166, %cst_45 : vector<8x128xi1>
    %168 = arith.andi %110, %167 : vector<8x128xi1>
    %cst_46 = arith.constant 0.000000e+00 : f32
    %169 = vector.broadcast %cst_46 : f32 to vector<8x128xf32>
    %170 = arith.select %166, %129, %169 : vector<8x128xi1>, vector<8x128xf32>
    %cst_47 = arith.constant dense<0.000000e+00> : vector<128xf32>
    %171 = vector.multi_reduction <add>, %170, %cst_47 [0] : vector<8x128xf32> to vector<128xf32>
    %172 = vector.shape_cast %171 : vector<128xf32> to vector<1x128xf32>
    %173 = tpu.reciprocal %172 {approx = true} : vector<1x128xf32> -> vector<1x128xf32>
    %174 = arith.mulf %172, %173 : vector<1x128xf32>
    %cst_48 = arith.constant 2.000000e+00 : f32
    %175 = vector.broadcast %cst_48 : f32 to vector<1x128xf32>
    %176 = arith.subf %175, %174 : vector<1x128xf32>
    %177 = arith.mulf %173, %176 : vector<1x128xf32>
    %cst_49 = arith.constant 0.000000e+00 : f32
    %178 = vector.broadcast %cst_49 : f32 to vector<8x128xf32>
    %179 = arith.select %166, %178, %129 : vector<8x128xi1>, vector<8x128xf32>
    %cst_50 = arith.constant 0.000000e+00 : f32
    %180 = vector.broadcast %cst_50 : f32 to vector<8x128xf32>
    %181 = arith.select %166, %137, %180 : vector<8x128xi1>, vector<8x128xf32>
    %cst_51 = arith.constant dense<0.000000e+00> : vector<128xf32>
    %182 = vector.multi_reduction <add>, %181, %cst_51 [0] : vector<8x128xf32> to vector<128xf32>
    %183 = vector.shape_cast %182 : vector<128xf32> to vector<1x128xf32>
    %184 = arith.mulf %183, %177 : vector<1x128xf32>
    %185 = vector.broadcast %184 : vector<1x128xf32> to vector<8x128xf32>
    %186 = arith.mulf %179, %185 : vector<8x128xf32>
    %187 = arith.subf %137, %186 : vector<8x128xf32>
    %cst_52 = arith.constant 0.000000e+00 : f32
    %188 = vector.broadcast %cst_52 : f32 to vector<8x128xf32>
    %189 = arith.select %166, %145, %188 : vector<8x128xi1>, vector<8x128xf32>
    %cst_53 = arith.constant dense<0.000000e+00> : vector<128xf32>
    %190 = vector.multi_reduction <add>, %189, %cst_53 [0] : vector<8x128xf32> to vector<128xf32>
    %191 = vector.shape_cast %190 : vector<128xf32> to vector<1x128xf32>
    %192 = arith.mulf %191, %177 : vector<1x128xf32>
    %193 = vector.broadcast %192 : vector<1x128xf32> to vector<8x128xf32>
    %194 = arith.mulf %179, %193 : vector<8x128xf32>
    %195 = arith.subf %145, %194 : vector<8x128xf32>
    %cst_54 = arith.constant 0.000000e+00 : f32
    %196 = vector.broadcast %cst_54 : f32 to vector<8x128xf32>
    %197 = arith.select %166, %153, %196 : vector<8x128xi1>, vector<8x128xf32>
    %cst_55 = arith.constant dense<0.000000e+00> : vector<128xf32>
    %198 = vector.multi_reduction <add>, %197, %cst_55 [0] : vector<8x128xf32> to vector<128xf32>
    %199 = vector.shape_cast %198 : vector<128xf32> to vector<1x128xf32>
    %200 = arith.mulf %199, %177 : vector<1x128xf32>
    %201 = vector.broadcast %200 : vector<1x128xf32> to vector<8x128xf32>
    %202 = arith.mulf %179, %201 : vector<8x128xf32>
    %203 = arith.subf %153, %202 : vector<8x128xf32>
    %204 = math.absf %10 : vector<8x128xf32>
    %cst_56 = arith.constant -1.000000e+00 : f32
    %205 = vector.broadcast %cst_56 : f32 to vector<8x128xf32>
    %206 = arith.select %168, %204, %205 : vector<8x128xi1>, vector<8x128xf32>
    %cst_57 = arith.constant dense<0xFF800000> : vector<128xf32>
    %207 = vector.multi_reduction <maximumf>, %206, %cst_57 [0] : vector<8x128xf32> to vector<128xf32>
    %208 = vector.shape_cast %207 : vector<128xf32> to vector<1x128xf32>
    %209 = vector.broadcast %208 : vector<1x128xf32> to vector<8x128xf32>
    %210 = arith.cmpf oeq, %206, %209 : vector<8x128xf32>
    %c127_i32_58 = arith.constant 127 : i32
    %211 = vector.broadcast %c127_i32_58 : i32 to vector<8x128xi32>
    %212 = arith.select %210, %28, %211 : vector<8x128xi1>, vector<8x128xi32>
    %cst_59 = arith.constant dense<2147483647> : vector<128xi32>
    %213 = vector.multi_reduction <minsi>, %212, %cst_59 [0] : vector<8x128xi32> to vector<128xi32>
    %214 = vector.shape_cast %213 : vector<128xi32> to vector<1x128xi32>
    %215 = vector.broadcast %214 : vector<1x128xi32> to vector<8x128xi32>
    %216 = arith.cmpi eq, %28, %215 : vector<8x128xi32>
    %cst_60 = arith.constant dense<true> : vector<8x128xi1>
    %217 = arith.xori %216, %cst_60 : vector<8x128xi1>
    %218 = arith.andi %168, %217 : vector<8x128xi1>
    %cst_61 = arith.constant 0.000000e+00 : f32
    %219 = vector.broadcast %cst_61 : f32 to vector<8x128xf32>
    %220 = arith.select %216, %10, %219 : vector<8x128xi1>, vector<8x128xf32>
    %cst_62 = arith.constant dense<0.000000e+00> : vector<128xf32>
    %221 = vector.multi_reduction <add>, %220, %cst_62 [0] : vector<8x128xf32> to vector<128xf32>
    %222 = vector.shape_cast %221 : vector<128xf32> to vector<1x128xf32>
    %223 = tpu.reciprocal %222 {approx = true} : vector<1x128xf32> -> vector<1x128xf32>
    %224 = arith.mulf %222, %223 : vector<1x128xf32>
    %cst_63 = arith.constant 2.000000e+00 : f32
    %225 = vector.broadcast %cst_63 : f32 to vector<1x128xf32>
    %226 = arith.subf %225, %224 : vector<1x128xf32>
    %227 = arith.mulf %223, %226 : vector<1x128xf32>
    %cst_64 = arith.constant 0.000000e+00 : f32
    %228 = vector.broadcast %cst_64 : f32 to vector<8x128xf32>
    %229 = arith.select %216, %228, %10 : vector<8x128xi1>, vector<8x128xf32>
    %cst_65 = arith.constant 0.000000e+00 : f32
    %230 = vector.broadcast %cst_65 : f32 to vector<8x128xf32>
    %231 = arith.select %216, %11, %230 : vector<8x128xi1>, vector<8x128xf32>
    %cst_66 = arith.constant dense<0.000000e+00> : vector<128xf32>
    %232 = vector.multi_reduction <add>, %231, %cst_66 [0] : vector<8x128xf32> to vector<128xf32>
    %233 = vector.shape_cast %232 : vector<128xf32> to vector<1x128xf32>
    %234 = arith.mulf %233, %227 : vector<1x128xf32>
    %235 = vector.broadcast %234 : vector<1x128xf32> to vector<8x128xf32>
    %236 = arith.mulf %229, %235 : vector<8x128xf32>
    %237 = arith.subf %11, %236 : vector<8x128xf32>
    %cst_67 = arith.constant 0.000000e+00 : f32
    %238 = vector.broadcast %cst_67 : f32 to vector<8x128xf32>
    %239 = arith.select %216, %12, %238 : vector<8x128xi1>, vector<8x128xf32>
    %cst_68 = arith.constant dense<0.000000e+00> : vector<128xf32>
    %240 = vector.multi_reduction <add>, %239, %cst_68 [0] : vector<8x128xf32> to vector<128xf32>
    %241 = vector.shape_cast %240 : vector<128xf32> to vector<1x128xf32>
    %242 = arith.mulf %241, %227 : vector<1x128xf32>
    %243 = vector.broadcast %242 : vector<1x128xf32> to vector<8x128xf32>
    %244 = arith.mulf %229, %243 : vector<8x128xf32>
    %245 = arith.subf %12, %244 : vector<8x128xf32>
    %cst_69 = arith.constant 0.000000e+00 : f32
    %246 = vector.broadcast %cst_69 : f32 to vector<8x128xf32>
    %247 = arith.select %216, %187, %246 : vector<8x128xi1>, vector<8x128xf32>
    %cst_70 = arith.constant dense<0.000000e+00> : vector<128xf32>
    %248 = vector.multi_reduction <add>, %247, %cst_70 [0] : vector<8x128xf32> to vector<128xf32>
    %249 = vector.shape_cast %248 : vector<128xf32> to vector<1x128xf32>
    %250 = arith.mulf %249, %227 : vector<1x128xf32>
    %251 = vector.broadcast %250 : vector<1x128xf32> to vector<8x128xf32>
    %252 = arith.mulf %229, %251 : vector<8x128xf32>
    %253 = arith.subf %187, %252 : vector<8x128xf32>
    %cst_71 = arith.constant 0.000000e+00 : f32
    %254 = vector.broadcast %cst_71 : f32 to vector<8x128xf32>
    %255 = arith.select %216, %195, %254 : vector<8x128xi1>, vector<8x128xf32>
    %cst_72 = arith.constant dense<0.000000e+00> : vector<128xf32>
    %256 = vector.multi_reduction <add>, %255, %cst_72 [0] : vector<8x128xf32> to vector<128xf32>
    %257 = vector.shape_cast %256 : vector<128xf32> to vector<1x128xf32>
    %258 = arith.mulf %257, %227 : vector<1x128xf32>
    %259 = vector.broadcast %258 : vector<1x128xf32> to vector<8x128xf32>
    %260 = arith.mulf %229, %259 : vector<8x128xf32>
    %261 = arith.subf %195, %260 : vector<8x128xf32>
    %cst_73 = arith.constant 0.000000e+00 : f32
    %262 = vector.broadcast %cst_73 : f32 to vector<8x128xf32>
    %263 = arith.select %216, %203, %262 : vector<8x128xi1>, vector<8x128xf32>
    %cst_74 = arith.constant dense<0.000000e+00> : vector<128xf32>
    %264 = vector.multi_reduction <add>, %263, %cst_74 [0] : vector<8x128xf32> to vector<128xf32>
    %265 = vector.shape_cast %264 : vector<128xf32> to vector<1x128xf32>
    %266 = arith.mulf %265, %227 : vector<1x128xf32>
    %267 = vector.broadcast %266 : vector<1x128xf32> to vector<8x128xf32>
    %268 = arith.mulf %229, %267 : vector<8x128xf32>
    %269 = arith.subf %203, %268 : vector<8x128xf32>
    %270 = math.absf %237 : vector<8x128xf32>
    %cst_75 = arith.constant -1.000000e+00 : f32
    %271 = vector.broadcast %cst_75 : f32 to vector<8x128xf32>
    %272 = arith.select %218, %270, %271 : vector<8x128xi1>, vector<8x128xf32>
    %cst_76 = arith.constant dense<0xFF800000> : vector<128xf32>
    %273 = vector.multi_reduction <maximumf>, %272, %cst_76 [0] : vector<8x128xf32> to vector<128xf32>
    %274 = vector.shape_cast %273 : vector<128xf32> to vector<1x128xf32>
    %275 = vector.broadcast %274 : vector<1x128xf32> to vector<8x128xf32>
    %276 = arith.cmpf oeq, %272, %275 : vector<8x128xf32>
    %c127_i32_77 = arith.constant 127 : i32
    %277 = vector.broadcast %c127_i32_77 : i32 to vector<8x128xi32>
    %278 = arith.select %276, %28, %277 : vector<8x128xi1>, vector<8x128xi32>
    %cst_78 = arith.constant dense<2147483647> : vector<128xi32>
    %279 = vector.multi_reduction <minsi>, %278, %cst_78 [0] : vector<8x128xi32> to vector<128xi32>
    %280 = vector.shape_cast %279 : vector<128xi32> to vector<1x128xi32>
    %281 = vector.broadcast %280 : vector<1x128xi32> to vector<8x128xi32>
    %282 = arith.cmpi eq, %28, %281 : vector<8x128xi32>
    %cst_79 = arith.constant dense<true> : vector<8x128xi1>
    %283 = arith.xori %282, %cst_79 : vector<8x128xi1>
    %284 = arith.andi %218, %283 : vector<8x128xi1>
    %cst_80 = arith.constant 0.000000e+00 : f32
    %285 = vector.broadcast %cst_80 : f32 to vector<8x128xf32>
    %286 = arith.select %282, %237, %285 : vector<8x128xi1>, vector<8x128xf32>
    %cst_81 = arith.constant dense<0.000000e+00> : vector<128xf32>
    %287 = vector.multi_reduction <add>, %286, %cst_81 [0] : vector<8x128xf32> to vector<128xf32>
    %288 = vector.shape_cast %287 : vector<128xf32> to vector<1x128xf32>
    %289 = tpu.reciprocal %288 {approx = true} : vector<1x128xf32> -> vector<1x128xf32>
    %290 = arith.mulf %288, %289 : vector<1x128xf32>
    %cst_82 = arith.constant 2.000000e+00 : f32
    %291 = vector.broadcast %cst_82 : f32 to vector<1x128xf32>
    %292 = arith.subf %291, %290 : vector<1x128xf32>
    %293 = arith.mulf %289, %292 : vector<1x128xf32>
    %cst_83 = arith.constant 0.000000e+00 : f32
    %294 = vector.broadcast %cst_83 : f32 to vector<8x128xf32>
    %295 = arith.select %282, %294, %237 : vector<8x128xi1>, vector<8x128xf32>
    %cst_84 = arith.constant 0.000000e+00 : f32
    %296 = vector.broadcast %cst_84 : f32 to vector<8x128xf32>
    %297 = arith.select %282, %245, %296 : vector<8x128xi1>, vector<8x128xf32>
    %cst_85 = arith.constant dense<0.000000e+00> : vector<128xf32>
    %298 = vector.multi_reduction <add>, %297, %cst_85 [0] : vector<8x128xf32> to vector<128xf32>
    %299 = vector.shape_cast %298 : vector<128xf32> to vector<1x128xf32>
    %300 = arith.mulf %299, %293 : vector<1x128xf32>
    %301 = vector.broadcast %300 : vector<1x128xf32> to vector<8x128xf32>
    %302 = arith.mulf %295, %301 : vector<8x128xf32>
    %303 = arith.subf %245, %302 : vector<8x128xf32>
    %cst_86 = arith.constant 0.000000e+00 : f32
    %304 = vector.broadcast %cst_86 : f32 to vector<8x128xf32>
    %305 = arith.select %282, %253, %304 : vector<8x128xi1>, vector<8x128xf32>
    %cst_87 = arith.constant dense<0.000000e+00> : vector<128xf32>
    %306 = vector.multi_reduction <add>, %305, %cst_87 [0] : vector<8x128xf32> to vector<128xf32>
    %307 = vector.shape_cast %306 : vector<128xf32> to vector<1x128xf32>
    %308 = arith.mulf %307, %293 : vector<1x128xf32>
    %309 = vector.broadcast %308 : vector<1x128xf32> to vector<8x128xf32>
    %310 = arith.mulf %295, %309 : vector<8x128xf32>
    %311 = arith.subf %253, %310 : vector<8x128xf32>
    %cst_88 = arith.constant 0.000000e+00 : f32
    %312 = vector.broadcast %cst_88 : f32 to vector<8x128xf32>
    %313 = arith.select %282, %261, %312 : vector<8x128xi1>, vector<8x128xf32>
    %cst_89 = arith.constant dense<0.000000e+00> : vector<128xf32>
    %314 = vector.multi_reduction <add>, %313, %cst_89 [0] : vector<8x128xf32> to vector<128xf32>
    %315 = vector.shape_cast %314 : vector<128xf32> to vector<1x128xf32>
    %316 = arith.mulf %315, %293 : vector<1x128xf32>
    %317 = vector.broadcast %316 : vector<1x128xf32> to vector<8x128xf32>
    %318 = arith.mulf %295, %317 : vector<8x128xf32>
    %319 = arith.subf %261, %318 : vector<8x128xf32>
    %cst_90 = arith.constant 0.000000e+00 : f32
    %320 = vector.broadcast %cst_90 : f32 to vector<8x128xf32>
    %321 = arith.select %282, %269, %320 : vector<8x128xi1>, vector<8x128xf32>
    %cst_91 = arith.constant dense<0.000000e+00> : vector<128xf32>
    %322 = vector.multi_reduction <add>, %321, %cst_91 [0] : vector<8x128xf32> to vector<128xf32>
    %323 = vector.shape_cast %322 : vector<128xf32> to vector<1x128xf32>
    %324 = arith.mulf %323, %293 : vector<1x128xf32>
    %325 = vector.broadcast %324 : vector<1x128xf32> to vector<8x128xf32>
    %326 = arith.mulf %295, %325 : vector<8x128xf32>
    %327 = arith.subf %269, %326 : vector<8x128xf32>
    %328 = math.absf %303 : vector<8x128xf32>
    %cst_92 = arith.constant -1.000000e+00 : f32
    %329 = vector.broadcast %cst_92 : f32 to vector<8x128xf32>
    %330 = arith.select %284, %328, %329 : vector<8x128xi1>, vector<8x128xf32>
    %cst_93 = arith.constant dense<0xFF800000> : vector<128xf32>
    %331 = vector.multi_reduction <maximumf>, %330, %cst_93 [0] : vector<8x128xf32> to vector<128xf32>
    %332 = vector.shape_cast %331 : vector<128xf32> to vector<1x128xf32>
    %333 = vector.broadcast %332 : vector<1x128xf32> to vector<8x128xf32>
    %334 = arith.cmpf oeq, %330, %333 : vector<8x128xf32>
    %c127_i32_94 = arith.constant 127 : i32
    %335 = vector.broadcast %c127_i32_94 : i32 to vector<8x128xi32>
    %336 = arith.select %334, %28, %335 : vector<8x128xi1>, vector<8x128xi32>
    %cst_95 = arith.constant dense<2147483647> : vector<128xi32>
    %337 = vector.multi_reduction <minsi>, %336, %cst_95 [0] : vector<8x128xi32> to vector<128xi32>
    %338 = vector.shape_cast %337 : vector<128xi32> to vector<1x128xi32>
    %339 = vector.broadcast %338 : vector<1x128xi32> to vector<8x128xi32>
    %340 = arith.cmpi eq, %28, %339 : vector<8x128xi32>
    %cst_96 = arith.constant dense<true> : vector<8x128xi1>
    %341 = arith.xori %340, %cst_96 : vector<8x128xi1>
    %342 = arith.andi %284, %341 : vector<8x128xi1>
    %cst_97 = arith.constant 0.000000e+00 : f32
    %343 = vector.broadcast %cst_97 : f32 to vector<8x128xf32>
    %344 = arith.select %340, %303, %343 : vector<8x128xi1>, vector<8x128xf32>
    %cst_98 = arith.constant dense<0.000000e+00> : vector<128xf32>
    %345 = vector.multi_reduction <add>, %344, %cst_98 [0] : vector<8x128xf32> to vector<128xf32>
    %346 = vector.shape_cast %345 : vector<128xf32> to vector<1x128xf32>
    %347 = tpu.reciprocal %346 {approx = true} : vector<1x128xf32> -> vector<1x128xf32>
    %348 = arith.mulf %346, %347 : vector<1x128xf32>
    %cst_99 = arith.constant 2.000000e+00 : f32
    %349 = vector.broadcast %cst_99 : f32 to vector<1x128xf32>
    %350 = arith.subf %349, %348 : vector<1x128xf32>
    %351 = arith.mulf %347, %350 : vector<1x128xf32>
    %cst_100 = arith.constant 0.000000e+00 : f32
    %352 = vector.broadcast %cst_100 : f32 to vector<8x128xf32>
    %353 = arith.select %340, %352, %303 : vector<8x128xi1>, vector<8x128xf32>
    %cst_101 = arith.constant 0.000000e+00 : f32
    %354 = vector.broadcast %cst_101 : f32 to vector<8x128xf32>
    %355 = arith.select %340, %311, %354 : vector<8x128xi1>, vector<8x128xf32>
    %cst_102 = arith.constant dense<0.000000e+00> : vector<128xf32>
    %356 = vector.multi_reduction <add>, %355, %cst_102 [0] : vector<8x128xf32> to vector<128xf32>
    %357 = vector.shape_cast %356 : vector<128xf32> to vector<1x128xf32>
    %358 = arith.mulf %357, %351 : vector<1x128xf32>
    %359 = vector.broadcast %358 : vector<1x128xf32> to vector<8x128xf32>
    %360 = arith.mulf %353, %359 : vector<8x128xf32>
    %361 = arith.subf %311, %360 : vector<8x128xf32>
    %cst_103 = arith.constant 0.000000e+00 : f32
    %362 = vector.broadcast %cst_103 : f32 to vector<8x128xf32>
    %363 = arith.select %340, %319, %362 : vector<8x128xi1>, vector<8x128xf32>
    %cst_104 = arith.constant dense<0.000000e+00> : vector<128xf32>
    %364 = vector.multi_reduction <add>, %363, %cst_104 [0] : vector<8x128xf32> to vector<128xf32>
    %365 = vector.shape_cast %364 : vector<128xf32> to vector<1x128xf32>
    %366 = arith.mulf %365, %351 : vector<1x128xf32>
    %367 = vector.broadcast %366 : vector<1x128xf32> to vector<8x128xf32>
    %368 = arith.mulf %353, %367 : vector<8x128xf32>
    %369 = arith.subf %319, %368 : vector<8x128xf32>
    %cst_105 = arith.constant 0.000000e+00 : f32
    %370 = vector.broadcast %cst_105 : f32 to vector<8x128xf32>
    %371 = arith.select %340, %327, %370 : vector<8x128xi1>, vector<8x128xf32>
    %cst_106 = arith.constant dense<0.000000e+00> : vector<128xf32>
    %372 = vector.multi_reduction <add>, %371, %cst_106 [0] : vector<8x128xf32> to vector<128xf32>
    %373 = vector.shape_cast %372 : vector<128xf32> to vector<1x128xf32>
    %374 = arith.mulf %373, %351 : vector<1x128xf32>
    %375 = vector.broadcast %374 : vector<1x128xf32> to vector<8x128xf32>
    %376 = arith.mulf %353, %375 : vector<8x128xf32>
    %377 = arith.subf %327, %376 : vector<8x128xf32>
    %378 = math.absf %361 : vector<8x128xf32>
    %cst_107 = arith.constant -1.000000e+00 : f32
    %379 = vector.broadcast %cst_107 : f32 to vector<8x128xf32>
    %380 = arith.select %342, %378, %379 : vector<8x128xi1>, vector<8x128xf32>
    %cst_108 = arith.constant dense<0xFF800000> : vector<128xf32>
    %381 = vector.multi_reduction <maximumf>, %380, %cst_108 [0] : vector<8x128xf32> to vector<128xf32>
    %382 = vector.shape_cast %381 : vector<128xf32> to vector<1x128xf32>
    %383 = vector.broadcast %382 : vector<1x128xf32> to vector<8x128xf32>
    %384 = arith.cmpf oeq, %380, %383 : vector<8x128xf32>
    %c127_i32_109 = arith.constant 127 : i32
    %385 = vector.broadcast %c127_i32_109 : i32 to vector<8x128xi32>
    %386 = arith.select %384, %28, %385 : vector<8x128xi1>, vector<8x128xi32>
    %cst_110 = arith.constant dense<2147483647> : vector<128xi32>
    %387 = vector.multi_reduction <minsi>, %386, %cst_110 [0] : vector<8x128xi32> to vector<128xi32>
    %388 = vector.shape_cast %387 : vector<128xi32> to vector<1x128xi32>
    %389 = vector.broadcast %388 : vector<1x128xi32> to vector<8x128xi32>
    %390 = arith.cmpi eq, %28, %389 : vector<8x128xi32>
    %cst_111 = arith.constant dense<true> : vector<8x128xi1>
    %391 = arith.xori %390, %cst_111 : vector<8x128xi1>
    %392 = arith.andi %342, %391 : vector<8x128xi1>
    %cst_112 = arith.constant 0.000000e+00 : f32
    %393 = vector.broadcast %cst_112 : f32 to vector<8x128xf32>
    %394 = arith.select %390, %361, %393 : vector<8x128xi1>, vector<8x128xf32>
    %cst_113 = arith.constant dense<0.000000e+00> : vector<128xf32>
    %395 = vector.multi_reduction <add>, %394, %cst_113 [0] : vector<8x128xf32> to vector<128xf32>
    %396 = vector.shape_cast %395 : vector<128xf32> to vector<1x128xf32>
    %397 = tpu.reciprocal %396 {approx = true} : vector<1x128xf32> -> vector<1x128xf32>
    %398 = arith.mulf %396, %397 : vector<1x128xf32>
    %cst_114 = arith.constant 2.000000e+00 : f32
    %399 = vector.broadcast %cst_114 : f32 to vector<1x128xf32>
    %400 = arith.subf %399, %398 : vector<1x128xf32>
    %401 = arith.mulf %397, %400 : vector<1x128xf32>
    %cst_115 = arith.constant 0.000000e+00 : f32
    %402 = vector.broadcast %cst_115 : f32 to vector<8x128xf32>
    %403 = arith.select %390, %402, %361 : vector<8x128xi1>, vector<8x128xf32>
    %cst_116 = arith.constant 0.000000e+00 : f32
    %404 = vector.broadcast %cst_116 : f32 to vector<8x128xf32>
    %405 = arith.select %390, %369, %404 : vector<8x128xi1>, vector<8x128xf32>
    %cst_117 = arith.constant dense<0.000000e+00> : vector<128xf32>
    %406 = vector.multi_reduction <add>, %405, %cst_117 [0] : vector<8x128xf32> to vector<128xf32>
    %407 = vector.shape_cast %406 : vector<128xf32> to vector<1x128xf32>
    %408 = arith.mulf %407, %401 : vector<1x128xf32>
    %409 = vector.broadcast %408 : vector<1x128xf32> to vector<8x128xf32>
    %410 = arith.mulf %403, %409 : vector<8x128xf32>
    %411 = arith.subf %369, %410 : vector<8x128xf32>
    %cst_118 = arith.constant 0.000000e+00 : f32
    %412 = vector.broadcast %cst_118 : f32 to vector<8x128xf32>
    %413 = arith.select %390, %377, %412 : vector<8x128xi1>, vector<8x128xf32>
    %cst_119 = arith.constant dense<0.000000e+00> : vector<128xf32>
    %414 = vector.multi_reduction <add>, %413, %cst_119 [0] : vector<8x128xf32> to vector<128xf32>
    %415 = vector.shape_cast %414 : vector<128xf32> to vector<1x128xf32>
    %416 = arith.mulf %415, %401 : vector<1x128xf32>
    %417 = vector.broadcast %416 : vector<1x128xf32> to vector<8x128xf32>
    %418 = arith.mulf %403, %417 : vector<8x128xf32>
    %419 = arith.subf %377, %418 : vector<8x128xf32>
    %420 = math.absf %411 : vector<8x128xf32>
    %cst_120 = arith.constant -1.000000e+00 : f32
    %421 = vector.broadcast %cst_120 : f32 to vector<8x128xf32>
    %422 = arith.select %392, %420, %421 : vector<8x128xi1>, vector<8x128xf32>
    %cst_121 = arith.constant dense<0xFF800000> : vector<128xf32>
    %423 = vector.multi_reduction <maximumf>, %422, %cst_121 [0] : vector<8x128xf32> to vector<128xf32>
    %424 = vector.shape_cast %423 : vector<128xf32> to vector<1x128xf32>
    %425 = vector.broadcast %424 : vector<1x128xf32> to vector<8x128xf32>
    %426 = arith.cmpf oeq, %422, %425 : vector<8x128xf32>
    %c127_i32_122 = arith.constant 127 : i32
    %427 = vector.broadcast %c127_i32_122 : i32 to vector<8x128xi32>
    %428 = arith.select %426, %28, %427 : vector<8x128xi1>, vector<8x128xi32>
    %cst_123 = arith.constant dense<2147483647> : vector<128xi32>
    %429 = vector.multi_reduction <minsi>, %428, %cst_123 [0] : vector<8x128xi32> to vector<128xi32>
    %430 = vector.shape_cast %429 : vector<128xi32> to vector<1x128xi32>
    %431 = vector.broadcast %430 : vector<1x128xi32> to vector<8x128xi32>
    %432 = arith.cmpi eq, %28, %431 : vector<8x128xi32>
    %cst_124 = arith.constant 0.000000e+00 : f32
    %433 = vector.broadcast %cst_124 : f32 to vector<8x128xf32>
    %434 = arith.select %432, %411, %433 : vector<8x128xi1>, vector<8x128xf32>
    %cst_125 = arith.constant dense<0.000000e+00> : vector<128xf32>
    %435 = vector.multi_reduction <add>, %434, %cst_125 [0] : vector<8x128xf32> to vector<128xf32>
    %436 = vector.shape_cast %435 : vector<128xf32> to vector<1x128xf32>
    %437 = tpu.reciprocal %436 {approx = true} : vector<1x128xf32> -> vector<1x128xf32>
    %438 = arith.mulf %436, %437 : vector<1x128xf32>
    %cst_126 = arith.constant 2.000000e+00 : f32
    %439 = vector.broadcast %cst_126 : f32 to vector<1x128xf32>
    %440 = arith.subf %439, %438 : vector<1x128xf32>
    %441 = arith.mulf %437, %440 : vector<1x128xf32>
    %cst_127 = arith.constant 0.000000e+00 : f32
    %442 = vector.broadcast %cst_127 : f32 to vector<8x128xf32>
    %443 = arith.select %432, %442, %411 : vector<8x128xi1>, vector<8x128xf32>
    %cst_128 = arith.constant 0.000000e+00 : f32
    %444 = vector.broadcast %cst_128 : f32 to vector<8x128xf32>
    %445 = arith.select %432, %419, %444 : vector<8x128xi1>, vector<8x128xf32>
    %cst_129 = arith.constant dense<0.000000e+00> : vector<128xf32>
    %446 = vector.multi_reduction <add>, %445, %cst_129 [0] : vector<8x128xf32> to vector<128xf32>
    %447 = vector.shape_cast %446 : vector<128xf32> to vector<1x128xf32>
    %448 = arith.mulf %447, %441 : vector<1x128xf32>
    %449 = vector.broadcast %448 : vector<1x128xf32> to vector<8x128xf32>
    %450 = arith.mulf %443, %449 : vector<8x128xf32>
    %451 = arith.subf %419, %450 : vector<8x128xf32>
    %cst_130 = arith.constant 0.000000e+00 : f32
    %452 = vector.broadcast %cst_130 : f32 to vector<8x128xf32>
    %453 = arith.select %42, %451, %452 : vector<8x128xi1>, vector<8x128xf32>
    %cst_131 = arith.constant dense<0.000000e+00> : vector<128xf32>
    %454 = vector.multi_reduction <add>, %453, %cst_131 [0] : vector<8x128xf32> to vector<128xf32>
    %455 = vector.shape_cast %454 : vector<128xf32> to vector<1x128xf32>
    %456 = arith.mulf %455, %53 : vector<1x128xf32>
    %cst_132 = arith.constant 0.000000e+00 : f32
    %457 = vector.broadcast %cst_132 : f32 to vector<8x128xf32>
    %458 = arith.select %108, %451, %457 : vector<8x128xi1>, vector<8x128xf32>
    %cst_133 = arith.constant dense<0.000000e+00> : vector<128xf32>
    %459 = vector.multi_reduction <add>, %458, %cst_133 [0] : vector<8x128xf32> to vector<128xf32>
    %460 = vector.shape_cast %459 : vector<128xf32> to vector<1x128xf32>
    %461 = arith.mulf %460, %119 : vector<1x128xf32>
    %cst_134 = arith.constant 0.000000e+00 : f32
    %462 = vector.broadcast %cst_134 : f32 to vector<8x128xf32>
    %463 = arith.select %166, %451, %462 : vector<8x128xi1>, vector<8x128xf32>
    %cst_135 = arith.constant dense<0.000000e+00> : vector<128xf32>
    %464 = vector.multi_reduction <add>, %463, %cst_135 [0] : vector<8x128xf32> to vector<128xf32>
    %465 = vector.shape_cast %464 : vector<128xf32> to vector<1x128xf32>
    %466 = arith.mulf %465, %177 : vector<1x128xf32>
    %cst_136 = arith.constant 0.000000e+00 : f32
    %467 = vector.broadcast %cst_136 : f32 to vector<8x128xf32>
    %468 = arith.select %216, %451, %467 : vector<8x128xi1>, vector<8x128xf32>
    %cst_137 = arith.constant dense<0.000000e+00> : vector<128xf32>
    %469 = vector.multi_reduction <add>, %468, %cst_137 [0] : vector<8x128xf32> to vector<128xf32>
    %470 = vector.shape_cast %469 : vector<128xf32> to vector<1x128xf32>
    %471 = arith.mulf %470, %227 : vector<1x128xf32>
    %cst_138 = arith.constant 0.000000e+00 : f32
    %472 = vector.broadcast %cst_138 : f32 to vector<8x128xf32>
    %473 = arith.select %282, %451, %472 : vector<8x128xi1>, vector<8x128xf32>
    %cst_139 = arith.constant dense<0.000000e+00> : vector<128xf32>
    %474 = vector.multi_reduction <add>, %473, %cst_139 [0] : vector<8x128xf32> to vector<128xf32>
    %475 = vector.shape_cast %474 : vector<128xf32> to vector<1x128xf32>
    %476 = arith.mulf %475, %293 : vector<1x128xf32>
    %cst_140 = arith.constant 0.000000e+00 : f32
    %477 = vector.broadcast %cst_140 : f32 to vector<8x128xf32>
    %478 = arith.select %340, %451, %477 : vector<8x128xi1>, vector<8x128xf32>
    %cst_141 = arith.constant dense<0.000000e+00> : vector<128xf32>
    %479 = vector.multi_reduction <add>, %478, %cst_141 [0] : vector<8x128xf32> to vector<128xf32>
    %480 = vector.shape_cast %479 : vector<128xf32> to vector<1x128xf32>
    %481 = arith.mulf %480, %351 : vector<1x128xf32>
    %cst_142 = arith.constant 0.000000e+00 : f32
    %482 = vector.broadcast %cst_142 : f32 to vector<8x128xf32>
    %483 = arith.select %390, %451, %482 : vector<8x128xi1>, vector<8x128xf32>
    %cst_143 = arith.constant dense<0.000000e+00> : vector<128xf32>
    %484 = vector.multi_reduction <add>, %483, %cst_143 [0] : vector<8x128xf32> to vector<128xf32>
    %485 = vector.shape_cast %484 : vector<128xf32> to vector<1x128xf32>
    %486 = arith.mulf %485, %401 : vector<1x128xf32>
    %cst_144 = arith.constant 0.000000e+00 : f32
    %487 = vector.broadcast %cst_144 : f32 to vector<8x128xf32>
    %488 = arith.select %432, %451, %487 : vector<8x128xi1>, vector<8x128xf32>
    %cst_145 = arith.constant dense<0.000000e+00> : vector<128xf32>
    %489 = vector.multi_reduction <add>, %488, %cst_145 [0] : vector<8x128xf32> to vector<128xf32>
    %490 = vector.shape_cast %489 : vector<128xf32> to vector<1x128xf32>
    %491 = arith.mulf %490, %441 : vector<1x128xf32>
    %492 = tpu.concatenate %456, %461, %466, %471, %476, %481, %486, %491 in 0 : vector<1x128xf32>, vector<1x128xf32>, vector<1x128xf32>, vector<1x128xf32>, vector<1x128xf32>, vector<1x128xf32>, vector<1x128xf32>, vector<1x128xf32> -> vector<8x128xf32>
    %c0_146 = arith.constant 0 : index
    %c0_147 = arith.constant 0 : index
    %493 = vector.load %arg2[%c0_146, %c0_147] : memref<8x128xf32, #tpu.memory_space<vmem>>, vector<8x128xf32>
    tpu.vector_store %arg2[%c0_146, %c0_147], %492 {strides = array<i32>} : memref<8x128xf32, #tpu.memory_space<vmem>>, vector<8x128xf32>,
    return
  }
  func.func @transform_0(%arg0: i32) -> (i32, i32) {
    %c0_i32 = arith.constant 0 : i32
    %c0_i32_0 = arith.constant 0 : i32
    return %c0_i32, %arg0 : i32, i32
  }
  func.func @transform_1(%arg0: i32) -> (i32, i32) {
    %c0_i32 = arith.constant 0 : i32
    %c0_i32_0 = arith.constant 0 : i32
    return %c0_i32, %arg0 : i32, i32
  }
}

</mosaic_0001>

<bundles_post_ra>
// kernel: tpu_custom_call.1
= control target key start
LH: loop header
LB: loop body
LE: loop exit
PB: predicated region body
PF: predicated region fallthrough
CT: control target
= control target key end

     0   :  { %6 = vsyncpa [#allocation3], 0  ;;  %s1185_s0 = inlined_call_operand.hbm [shape: f32[16,128], index: 0, kind: input, shape index: {}]   ;;  %s1186_s1 = inlined_call_operand.hbm [shape: f32[8,128], index: 1, kind: output, shape index: {}]  }
   0x1   :  { %7 = vsyncpa [#allocation4], 0  ;;  %s744_s6 = smov [#allocation2]   ;;  %s696_s10 = scalar_lea.hbm %s1185_s0, 256 }
   0x2   :  { %s13_s7 = sshll.u32 %s744_s6, 4  ;;  %p697_p0 = scmp.ne.s32.totalorder %s1185_s0, %s696_s10  ;;  %s14_s7 = int_to_ptr.vmem [resolvable:$true] %s13_s7 }
   0x3   :  { %p700_p1 = scmp.lt.u32.totalorder %s696_s10, %s1185_s0 }
   0x5   :  { %p702_p2 = pnand %p700_p1, %p697_p0 }
   0x7   :  { %705 = shalt.err (!%p702_p2)
}
   0x8   :  { %s706_s15 = scalar_lea.vmem %s14_s7, 256  ;;  %p711_p4 = scmp.lt.s32.totalorder %s14_s7, %s14_s7 }
   0x9   :  { %p707_p3 = scmp.ne.s32.totalorder %s14_s7, %s706_s15  ;;  %p712_p5 = scmp.lt.s32.totalorder %s706_s15, %s706_s15 }
   0xb   :  { %p713_p6 = por %p712_p5, %p711_p4 }
   0xd   :  { %p714_p7 = pnand %p713_p6, %p707_p3 }
   0xf   :  { %717 = shalt.err (!%p714_p7)
}
  0x10   :  { %s745_s16 = smov 128   ;;  %s746_s17 = smov 8  }
  0x11   :  { %19 = dma.hbm_to_vmem [thread:$0]  %s1185_s0, 256, %s14_s7, [#allocation3], %s745_s16, %s745_s16, %s746_s17  }
  0x12   :  { %740 = dma.done.wait [#allocation3], 256  }
  0x13   :  { %741 = vsyncadd [#allocation3], 4294967040  ;;  %vm25_vm0 = vcmask 1043456   ;;  %v773_v0 = vld [vmem:[#allocation2] sm:$0xff]  ;;  %v775_v1 = vld [vmem:[#allocation2 + $0x8] sm:$0xff]  ;;  %v40_v13 = vlaneseq  ;;  %v747_v54 = vmov 0.0  }
  0x14   :  { %v779_v2 = vsel %vm25_vm0, %v773_v0, 0.0  ;;  %v782_v3 = vrot.slane %v773_v0, 4  ;;  %v35_v4 = vsub.f32 0.0, %v775_v1  ;;  %v31_v55 = vsel %vm25_vm0, 1.0, %v747_v54  ;;  %s750_s0 = smov [#allocation5]  }
  0x15   :  { %v42_v5 = vand.u32 2147483647, %v779_v2  ;;  %v794_v16 = vshrl.u32 %v40_v13, 7  ;;  %vm748_vm6 = vmmov 1   ;;  %s664_s20 = sshll.u32 %s750_s0, 4  ;;  %s665_s20 = int_to_ptr.vmem [resolvable:$true] %s664_s20 }
  0x16   :  { %v36_v6 = vmul.f32 %v35_v4, %v773_v0  ;;  %v37_v7 = vmul.f32 %v35_v4, %v782_v3  ;;  %v30_v26 = vsel %vm25_vm0, %v782_v3, 0.0  ;;  %s718_s21 = scalar_lea.vmem %s665_s20, 128  ;;  %p723_p9 = scmp.lt.s32.totalorder %s665_s20, %s665_s20 }
  0x17   :  { %v43_v8 = vrot.slane %v42_v5, 4  ;;  %p719_p8 = scmp.ne.s32.totalorder %s665_s20, %s718_s21  ;;  %p724_p10 = scmp.lt.s32.totalorder %s718_s21, %s718_s21 }
  0x18   :  { %v789_v9 = vsel %vm25_vm0, %v36_v6, %v37_v7  ;;  %v792_v10 = vsel %vm25_vm0, %v37_v7, %v36_v6 }
  0x19   :  { %v44_v11 = vmax.f32 %v42_v5, %v43_v8  ;;  %p725_p11 = por %p724_p10, %p723_p9 }
  0x1b   :  { %v45_v12 = vrot.slane %v44_v11, 2  ;;  %p726_p12 = pnand %p725_p11, %p719_p8 }
  0x1d   :  { %v46_v14 = vmax.f32 %v44_v11, %v45_v12 }
  0x1f   :  { %v47_v15 = vrot.slane %v46_v14, 1 }
  0x21   :  { %v48_v17 = vmax.f32 %v46_v14, %v47_v15 }
  0x23   :  { %vm49_vm1 = vcmp.eq.f32.partialorder %v42_v5, %v48_v17 }
  0x24   :  { %v50_v18 = vsel %vm49_vm1, %v794_v16, 127 }
  0x25   :  { %v51_v19 = vrot.slane %v50_v18, 4 }
  0x27   :  { %vm52_vm2 = vcmp.lt.s32.totalorder %v50_v18, %v51_v19 }
  0x28   :  { %v53_v20 = vsel %vm52_vm2, %v50_v18, %v51_v19 }
  0x29   :  { %v54_v21 = vrot.slane %v53_v20, 2 }
  0x2b   :  { %vm55_vm3 = vcmp.lt.s32.totalorder %v53_v20, %v54_v21 }
  0x2c   :  { %v56_v22 = vsel %vm55_vm3, %v53_v20, %v54_v21 }
  0x2d   :  { %v57_v23 = vrot.slane %v56_v22, 1 }
  0x2f   :  { %vm58_vm4 = vcmp.lt.s32.totalorder %v56_v22, %v57_v23 }
  0x30   :  { %v59_v24 = vsel %vm58_vm4, %v56_v22, %v57_v23 }
  0x31   :  { %vm798_vm5 = vcmp.eq.s32.totalorder %v794_v16, %v59_v24 }
  0x32   :  { %v62_v27 = vsel %vm798_vm5, %v779_v2, 0.0  ;;  %v74_v30 = vsel %vm798_vm5, %v30_v26, 0.0  ;;  %v94_v31 = vsel %vm798_vm5, %v789_v9, 0.0  ;;  %v104_v32 = vsel %vm798_vm5, %v792_v10, 0.0  ;;  %vm840_vm7 = vmxor %vm798_vm5, %vm748_vm6 }
  0x33   :  { %v63_v28 = vrot.slane %v62_v27, 4  ;;  %v75_v34 = vrot.slane %v74_v30, 4  ;;  %v95_v35 = vrot.slane %v94_v31, 4  ;;  %v105_v36 = vrot.slane %v104_v32, 4 }
  0x34   :  { %v73_v61 = vsel %vm798_vm5, 0.0, %v779_v2  ;;  %v84_v62 = vsel %vm798_vm5, %v31_v55, 0.0  ;;  %v114_v6 = vsel %vm798_vm5, %v775_v1, 0.0 }
  0x35   :  { %v64_v29 = vadd.f32 %v63_v28, %v62_v27  ;;  %v76_v39 = vadd.f32 %v75_v34, %v74_v30  ;;  %v96_v40 = vadd.f32 %v95_v35, %v94_v31  ;;  %v106_v41 = vadd.f32 %v105_v36, %v104_v32 }
  0x36   :  { %v85_v8 = vrot.slane %v84_v62, 4  ;;  %v115_v13 = vrot.slane %v114_v6, 4 }
  0x37   :  { %v65_v33 = vrot.slane %v64_v29, 2  ;;  %v77_v43 = vrot.slane %v76_v39, 2  ;;  %v97_v44 = vrot.slane %v96_v40, 2  ;;  %v107_v45 = vrot.slane %v106_v41, 2 }
  0x38   :  { %v86_v18 = vadd.f32 %v85_v8, %v84_v62  ;;  %v116_v20 = vadd.f32 %v115_v13, %v114_v6 }
  0x39   :  { %v66_v37 = vadd.f32 %v65_v33, %v64_v29  ;;  %v78_v46 = vadd.f32 %v77_v43, %v76_v39  ;;  %v98_v47 = vadd.f32 %v97_v44, %v96_v40  ;;  %v108_v48 = vadd.f32 %v107_v45, %v106_v41 }
  0x3a   :  { %v87_v22 = vrot.slane %v86_v18, 2  ;;  %v117_v23 = vrot.slane %v116_v20, 2 }
  0x3b   :  { %v67_v38 = vrot.slane %v66_v37, 1  ;;  %v79_v49 = vrot.slane %v78_v46, 1  ;;  %v99_v50 = vrot.slane %v98_v47, 1  ;;  %v109_v51 = vrot.slane %v108_v48, 1 }
  0x3c   :  { %v118_v27 = vadd.f32 %v117_v23, %v116_v20 }
  0x3d   :  { %v68_v42 = vadd.f32 %v67_v38, %v66_v37  ;;  %v80_v57 = vadd.f32 %v79_v49, %v78_v46  ;;  %v100_v58 = vadd.f32 %v99_v50, %v98_v47  ;;  %v110_v59 = vadd.f32 %v109_v51, %v108_v48 }
  0x3e   :  { %v119_v31 = vrot.slane %v118_v27, 1 }
  0x3f   :  { %680 = vrcp.f32 %v68_v42 }
  0x40   :  { %v120_v35 = vadd.f32 %v119_v31, %v118_v27 }
  0x49   :  { %v681_v52 = vpop.eup %680 }
  0x4a   :  { %v70_v53 = vmul.f32 %v681_v52, %v68_v42 }
  0x4c   :  { %v71_v56 = vsub.f32 2.0, %v70_v53 }
  0x4e   :  { %v816_v60 = vmul.f32 %v681_v52, %v71_v56 }
  0x50   :  { %v81_v63 = vmul.f32 %v80_v57, %v816_v60  ;;  %v101_v4 = vmul.f32 %v100_v58, %v816_v60  ;;  %v111_v5 = vmul.f32 %v110_v59, %v816_v60  ;;  %v121_v39 = vmul.f32 %v120_v35, %v816_v60 }
  0x52   :  { %v82_v7 = vmul.f32 %v81_v63, %v73_v61  ;;  %v102_v11 = vmul.f32 %v101_v4, %v73_v61  ;;  %v112_v12 = vmul.f32 %v111_v5, %v73_v61  ;;  %v122_v43 = vmul.f32 %v121_v39, %v73_v61 }
  0x54   :  { %v829_v14 = vsub.f32 %v30_v26, %v82_v7  ;;  %v832_v2 = vsub.f32 %v789_v9, %v102_v11  ;;  %v835_v15 = vsub.f32 %v792_v10, %v112_v12  ;;  %v88_v26 = vadd.f32 %v87_v22, %v86_v18 }
  0x55   :  { %v123_v47 = vsub.f32 %v775_v1, %v122_v43 }
  0x56   :  { %v124_v19 = vand.u32 2147483647, %v829_v14  ;;  %v89_v30 = vrot.slane %v88_v26, 1 }
  0x58   :  { %v125_v21 = vsel %vm840_vm7, %v124_v19, -1.0  ;;  %v90_v33 = vadd.f32 %v89_v30, %v88_v26 }
  0x59   :  { %v126_v9 = vrot.slane %v125_v21, 4 }
  0x5a   :  { %v91_v37 = vmul.f32 %v90_v33, %v816_v60 }
  0x5b   :  { %v127_v10 = vmax.f32 %v125_v21, %v126_v9 }
  0x5c   :  { %v92_v41 = vmul.f32 %v91_v37, %v73_v61 }
  0x5d   :  { %v128_v24 = vrot.slane %v127_v10, 2 }
  0x5e   :  { %v93_v45 = vsub.f32 %v31_v55, %v92_v41 }
  0x5f   :  { %v129_v28 = vmax.f32 %v127_v10, %v128_v24 }
  0x61   :  { %v130_v29 = vrot.slane %v129_v28, 1 }
  0x63   :  { %v131_v32 = vmax.f32 %v129_v28, %v130_v29 }
  0x65   :  { %vm132_vm8 = vcmp.eq.f32.partialorder %v125_v21, %v131_v32 }
  0x66   :  { %v133_v34 = vsel %vm132_vm8, %v794_v16, 127 }
  0x67   :  { %v134_v36 = vrot.slane %v133_v34, 4 }
  0x69   :  { %vm135_vm9 = vcmp.lt.s32.totalorder %v133_v34, %v134_v36 }
  0x6a   :  { %v136_v38 = vsel %vm135_vm9, %v133_v34, %v134_v36 }
  0x6b   :  { %v137_v40 = vrot.slane %v136_v38, 2 }
  0x6d   :  { %vm138_vm10 = vcmp.lt.s32.totalorder %v136_v38, %v137_v40 }
  0x6e   :  { %v139_v42 = vsel %vm138_vm10, %v136_v38, %v137_v40 }
  0x6f   :  { %v140_v44 = vrot.slane %v139_v42, 1 }
  0x71   :  { %vm141_vm11 = vcmp.lt.s32.totalorder %v139_v42, %v140_v44 }
  0x72   :  { %v142_v46 = vsel %vm141_vm11, %v139_v42, %v140_v44 }
  0x73   :  { %vm852_vm12 = vcmp.eq.s32.totalorder %v794_v16, %v142_v46 }
  0x74   :  { %v146_v49 = vsel %vm852_vm12, %v829_v14, 0.0  ;;  %v158_v51 = vsel %vm852_vm12, %v93_v45, 0.0  ;;  %v168_v53 = vsel %vm852_vm12, %v832_v2, 0.0  ;;  %v178_v1 = vsel %vm852_vm12, %v835_v15, 0.0  ;;  %vm881_vm13 = vmxor %vm852_vm12, %vm748_vm6 }
  0x75   :  { %v147_v50 = vrot.slane %v146_v49, 4  ;;  %v188_v54 = vsel %vm852_vm12, %v123_v47, 0.0  ;;  %v159_v56 = vrot.slane %v158_v51, 4  ;;  %v169_v57 = vrot.slane %v168_v53, 4  ;;  %vm145_vm14 = vmand %vm840_vm7, %vm881_vm13 }
  0x76   :  { %v179_v58 = vrot.slane %v178_v1, 4  ;;  %v189_v59 = vrot.slane %v188_v54, 4  ;;  %v157_v33 = vsel %vm852_vm12, 0.0, %v829_v14 }
  0x77   :  { %v148_v52 = vadd.f32 %v147_v50, %v146_v49  ;;  %v160_v63 = vadd.f32 %v159_v56, %v158_v51  ;;  %v170_v4 = vadd.f32 %v169_v57, %v168_v53  ;;  %v908_v57 = vsel %vm25_vm0, 0.0, %v782_v3 }
  0x78   :  { %v180_v5 = vadd.f32 %v179_v58, %v178_v1  ;;  %v190_v6 = vadd.f32 %v189_v59, %v188_v54 }
  0x79   :  { %v149_v55 = vrot.slane %v148_v52, 2  ;;  %v161_v8 = vrot.slane %v160_v63, 2  ;;  %v171_v11 = vrot.slane %v170_v4, 2 }
  0x7a   :  { %v181_v12 = vrot.slane %v180_v5, 2  ;;  %v191_v13 = vrot.slane %v190_v6, 2 }
  0x7b   :  { %v150_v61 = vadd.f32 %v149_v55, %v148_v52  ;;  %v162_v18 = vadd.f32 %v161_v8, %v160_v63  ;;  %v172_v19 = vadd.f32 %v171_v11, %v170_v4 }
  0x7c   :  { %v182_v20 = vadd.f32 %v181_v12, %v180_v5  ;;  %v192_v21 = vadd.f32 %v191_v13, %v190_v6 }
  0x7d   :  { %v151_v62 = vrot.slane %v150_v61, 1  ;;  %v163_v9 = vrot.slane %v162_v18, 1  ;;  %v173_v22 = vrot.slane %v172_v19, 1 }
  0x7e   :  { %v183_v23 = vrot.slane %v182_v20, 1  ;;  %v193_v10 = vrot.slane %v192_v21, 1 }
  0x7f   :  { %v152_v7 = vadd.f32 %v151_v62, %v150_v61  ;;  %v164_v27 = vadd.f32 %v163_v9, %v162_v18  ;;  %v174_v29 = vadd.f32 %v173_v22, %v172_v19  ;;  %v262_v61 = vand.u32 2147483647, %v908_v57 }
  0x80   :  { %v184_v30 = vadd.f32 %v183_v23, %v182_v20  ;;  %v194_v31 = vadd.f32 %v193_v10, %v192_v21 }
  0x81   :  { %682 = vrcp.f32 %v152_v7 }
  0x8b   :  { %v683_v24 = vpop.eup %682 }
  0x8c   :  { %v154_v26 = vmul.f32 %v683_v24, %v152_v7 }
  0x8e   :  { %v155_v28 = vsub.f32 2.0, %v154_v26 }
  0x90   :  { %v869_v32 = vmul.f32 %v683_v24, %v155_v28 }
  0x92   :  { %v165_v34 = vmul.f32 %v164_v27, %v869_v32  ;;  %v175_v35 = vmul.f32 %v174_v29, %v869_v32  ;;  %v185_v36 = vmul.f32 %v184_v30, %v869_v32  ;;  %v195_v37 = vmul.f32 %v194_v31, %v869_v32 }
  0x94   :  { %v166_v39 = vmul.f32 %v165_v34, %v157_v33  ;;  %v176_v40 = vmul.f32 %v175_v35, %v157_v33  ;;  %v186_v41 = vmul.f32 %v185_v36, %v157_v33  ;;  %v196_v42 = vmul.f32 %v195_v37, %v157_v33 }
  0x96   :  { %v885_v14 = vsub.f32 %v93_v45, %v166_v39  ;;  %v888_v43 = vsub.f32 %v832_v2, %v176_v40  ;;  %v891_v44 = vsub.f32 %v835_v15, %v186_v41  ;;  %v893_v46 = vsub.f32 %v123_v47, %v196_v42 }
  0x98   :  { %v198_v49 = vand.u32 2147483647, %v885_v14 }
  0x9a   :  { %v199_v45 = vsel %vm145_vm14, %v198_v49, -1.0 }
  0x9b   :  { %v200_v2 = vrot.slane %v199_v45, 4 }
  0x9d   :  { %v201_v50 = vmax.f32 %v199_v45, %v200_v2 }
  0x9f   :  { %v202_v51 = vrot.slane %v201_v50, 2 }
  0xa1   :  { %v203_v15 = vmax.f32 %v201_v50, %v202_v51 }
  0xa3   :  { %v204_v52 = vrot.slane %v203_v15, 1 }
  0xa5   :  { %v205_v47 = vmax.f32 %v203_v15, %v204_v52 }
  0xa7   :  { %vm206_vm15 = vcmp.eq.f32.partialorder %v199_v45, %v205_v47 }
  0xa8   :  { %v207_v53 = vsel %vm206_vm15, %v794_v16, 127 }
  0xa9   :  { %v208_v1 = vrot.slane %v207_v53, 4 }
  0xab   :  { %vm209_vm1 = vcmp.lt.s32.totalorder %v207_v53, %v208_v1 }
  0xac   :  { %v210_v54 = vsel %vm209_vm1, %v207_v53, %v208_v1 }
  0xad   :  { %v211_v55 = vrot.slane %v210_v54, 2 }
  0xaf   :  { %vm212_vm2 = vcmp.lt.s32.totalorder %v210_v54, %v211_v55 }
  0xb0   :  { %v213_v56 = vsel %vm212_vm2, %v210_v54, %v211_v55  ;;  %v947_v55 = vsel %vm25_vm0, 0.0, %v773_v0 }
  0xb1   :  { %v214_v58 = vrot.slane %v213_v56, 1 }
  0xb3   :  { %vm215_vm3 = vcmp.lt.s32.totalorder %v213_v56, %v214_v58 }
  0xb4   :  { %v216_v59 = vsel %vm215_vm3, %v213_v56, %v214_v58 }
  0xb5   :  { %vm912_vm4 = vcmp.eq.s32.totalorder %v794_v16, %v216_v59 }
  0xb6   :  { %vm218_vm8 = vmxor %vm912_vm4, %vm748_vm6  ;;  %v220_v63 = vsel %vm912_vm4, %v885_v14, 0.0  ;;  %v232_v5 = vsel %vm912_vm4, %v888_v43, 0.0  ;;  %v242_v17 = vsel %vm912_vm4, %v891_v44, 0.0  ;;  %v252_v8 = vsel %vm912_vm4, %v893_v46, 0.0 }
  0xb7   :  { %vm927_vm9 = vmand %vm145_vm14, %vm218_vm8  ;;  %v221_v4 = vrot.slane %v220_v63, 4  ;;  %v233_v18 = vrot.slane %v232_v5, 4  ;;  %v243_v19 = vrot.slane %v242_v17, 4  ;;  %v253_v20 = vrot.slane %v252_v8, 4 }
  0xb8   :  { %v263_v6 = vsel %vm927_vm9, %v262_v61, -1.0  ;;  %v231_v56 = vsel %vm912_vm4, 0.0, %v885_v14 }
  0xb9   :  { %v222_v7 = vadd.f32 %v221_v4, %v220_v63  ;;  %v264_v11 = vrot.slane %v263_v6, 4  ;;  %v234_v10 = vadd.f32 %v233_v18, %v232_v5  ;;  %v244_v24 = vadd.f32 %v243_v19, %v242_v17 }
  0xba   :  { %v254_v26 = vadd.f32 %v253_v20, %v252_v8 }
  0xbb   :  { %v223_v12 = vrot.slane %v222_v7, 2  ;;  %v265_v13 = vmax.f32 %v263_v6, %v264_v11  ;;  %v235_v30 = vrot.slane %v234_v10, 2  ;;  %v245_v31 = vrot.slane %v244_v24, 2 }
  0xbc   :  { %v255_v33 = vrot.slane %v254_v26, 2 }
  0xbd   :  { %v224_v21 = vadd.f32 %v223_v12, %v222_v7  ;;  %v266_v9 = vrot.slane %v265_v13, 2  ;;  %v236_v36 = vadd.f32 %v235_v30, %v234_v10  ;;  %v246_v37 = vadd.f32 %v245_v31, %v244_v24 }
  0xbe   :  { %v256_v38 = vadd.f32 %v255_v33, %v254_v26 }
  0xbf   :  { %v225_v22 = vrot.slane %v224_v21, 1  ;;  %v267_v23 = vmax.f32 %v265_v13, %v266_v9  ;;  %v237_v41 = vrot.slane %v236_v36, 1  ;;  %v247_v42 = vrot.slane %v246_v37, 1 }
  0xc0   :  { %v257_v49 = vrot.slane %v256_v38, 1 }
  0xc1   :  { %v226_v27 = vadd.f32 %v225_v22, %v224_v21  ;;  %v268_v28 = vrot.slane %v267_v23, 1  ;;  %v238_v52 = vadd.f32 %v237_v41, %v236_v36  ;;  %v248_v47 = vadd.f32 %v247_v42, %v246_v37 }
  0xc2   :  { %v258_v53 = vadd.f32 %v257_v49, %v256_v38  ;;  %v749_v49 = vmov 1.0  }
  0xc3   :  { %684 = vrcp.f32 %v226_v27  ;;  %v269_v29 = vmax.f32 %v267_v23, %v268_v28 }
  0xc5   :  { %vm270_vm7 = vcmp.eq.f32.partialorder %v263_v6, %v269_v29 }
  0xc6   :  { %v271_v34 = vsel %vm270_vm7, %v794_v16, 127 }
  0xc7   :  { %v272_v35 = vrot.slane %v271_v34, 4 }
  0xc9   :  { %vm273_vm10 = vcmp.lt.s32.totalorder %v271_v34, %v272_v35 }
  0xca   :  { %v274_v39 = vsel %vm273_vm10, %v271_v34, %v272_v35 }
  0xcb   :  { %v275_v40 = vrot.slane %v274_v39, 2 }
  0xcd   :  { %v685_v45 = vpop.eup %684  ;;  %vm276_vm11 = vcmp.lt.s32.totalorder %v274_v39, %v275_v40 }
  0xce   :  { %v228_v2 = vmul.f32 %v685_v45, %v226_v27  ;;  %v277_v50 = vsel %vm276_vm11, %v274_v39, %v275_v40 }
  0xcf   :  { %v278_v51 = vrot.slane %v277_v50, 1 }
  0xd0   :  { %v229_v15 = vsub.f32 2.0, %v228_v2 }
  0xd1   :  { %vm279_vm13 = vcmp.lt.s32.totalorder %v277_v50, %v278_v51 }
  0xd2   :  { %v943_v1 = vmul.f32 %v685_v45, %v229_v15  ;;  %v280_v54 = vsel %vm279_vm13, %v277_v50, %v278_v51  ;;  %v34_v45 = vsel %vm25_vm0, 0.0, %v749_v49 }
  0xd3   :  { %vm953_vm14 = vcmp.eq.s32.totalorder %v794_v16, %v280_v54 }
  0xd4   :  { %v239_v59 = vmul.f32 %v238_v52, %v943_v1  ;;  %v249_v61 = vmul.f32 %v248_v47, %v943_v1  ;;  %v259_v63 = vmul.f32 %v258_v53, %v943_v1  ;;  %v284_v0 = vsel %vm953_vm14, %v908_v57, 0.0  ;;  %vm990_vm15 = vmxor %vm953_vm14, %vm748_vm6 }
  0xd5   :  { %v285_v4 = vrot.slane %v284_v0, 4  ;;  %v296_v17 = vsel %vm953_vm14, %v947_v55, 0.0  ;;  %v295_v53 = vsel %vm953_vm14, 0.0, %v908_v57  ;;  %v306_v54 = vsel %vm953_vm14, %v34_v45, 0.0  ;;  %vm283_vm1 = vmand %vm927_vm9, %vm990_vm15 }
  0xd6   :  { %v240_v5 = vmul.f32 %v239_v59, %v231_v56  ;;  %v250_v6 = vmul.f32 %v249_v61, %v231_v56  ;;  %v260_v7 = vmul.f32 %v259_v63, %v231_v56  ;;  %v297_v18 = vrot.slane %v296_v17, 4 }
  0xd7   :  { %v286_v14 = vadd.f32 %v285_v4, %v284_v0  ;;  %v307_v57 = vrot.slane %v306_v54, 4 }
  0xd8   :  { %v241_v8 = vsub.f32 %v888_v43, %v240_v5  ;;  %v251_v11 = vsub.f32 %v891_v44, %v250_v6  ;;  %v261_v12 = vsub.f32 %v893_v46, %v260_v7  ;;  %v298_v24 = vadd.f32 %v297_v18, %v296_v17 }
  0xd9   :  { %v287_v13 = vrot.slane %v286_v14, 2 }
  0xda   :  { %v316_v19 = vsel %vm953_vm14, %v241_v8, 0.0  ;;  %v326_v20 = vsel %vm953_vm14, %v251_v11, 0.0  ;;  %v336_v21 = vsel %vm953_vm14, %v261_v12, 0.0  ;;  %v299_v28 = vrot.slane %v298_v24, 2 }
  0xdb   :  { %v288_v9 = vadd.f32 %v287_v13, %v286_v14  ;;  %v317_v22 = vrot.slane %v316_v19, 4  ;;  %v327_v23 = vrot.slane %v326_v20, 4  ;;  %v337_v10 = vrot.slane %v336_v21, 4 }
  0xdc   :  { %v300_v33 = vadd.f32 %v299_v28, %v298_v24 }
  0xdd   :  { %v289_v43 = vrot.slane %v288_v9, 1  ;;  %v318_v44 = vadd.f32 %v317_v22, %v316_v19  ;;  %v328_v26 = vadd.f32 %v327_v23, %v326_v20  ;;  %v338_v27 = vadd.f32 %v337_v10, %v336_v21 }
  0xde   :  { %v301_v37 = vrot.slane %v300_v33, 1  ;;  %v308_v19 = vadd.f32 %v307_v57, %v306_v54 }
  0xdf   :  { %v290_v46 = vadd.f32 %v289_v43, %v288_v9  ;;  %v319_v29 = vrot.slane %v318_v44, 2  ;;  %v329_v30 = vrot.slane %v328_v26, 2  ;;  %v339_v31 = vrot.slane %v338_v27, 2 }
  0xe0   :  { %v302_v50 = vadd.f32 %v301_v37, %v300_v33  ;;  %v309_v21 = vrot.slane %v308_v19, 2 }
  0xe1   :  { %686 = vrcp.f32 %v290_v46  ;;  %v320_v34 = vadd.f32 %v319_v29, %v318_v44  ;;  %v330_v35 = vadd.f32 %v329_v30, %v328_v26  ;;  %v340_v36 = vadd.f32 %v339_v31, %v338_v27 }
  0xe2   :  { %v310_v22 = vadd.f32 %v309_v21, %v308_v19 }
  0xe3   :  { %v321_v38 = vrot.slane %v320_v34, 1  ;;  %v331_v39 = vrot.slane %v330_v35, 1  ;;  %v341_v41 = vrot.slane %v340_v36, 1 }
  0xe4   :  { %v311_v43 = vrot.slane %v310_v22, 1 }
  0xe5   :  { %v322_v51 = vadd.f32 %v321_v38, %v320_v34  ;;  %v332_v15 = vadd.f32 %v331_v39, %v330_v35  ;;  %v342_v52 = vadd.f32 %v341_v41, %v340_v36 }
  0xeb   :  { %v687_v40 = vpop.eup %686 }
  0xec   :  { %v292_v42 = vmul.f32 %v687_v40, %v290_v46 }
  0xee   :  { %v293_v2 = vsub.f32 2.0, %v292_v42 }
  0xf0   :  { %v976_v47 = vmul.f32 %v687_v40, %v293_v2 }
  0xf2   :  { %v303_v56 = vmul.f32 %v302_v50, %v976_v47  ;;  %v323_v59 = vmul.f32 %v322_v51, %v976_v47  ;;  %v333_v61 = vmul.f32 %v332_v15, %v976_v47  ;;  %v343_v63 = vmul.f32 %v342_v52, %v976_v47 }
  0xf4   :  { %v304_v4 = vmul.f32 %v303_v56, %v295_v53  ;;  %v324_v5 = vmul.f32 %v323_v59, %v295_v53  ;;  %v334_v6 = vmul.f32 %v333_v61, %v295_v53  ;;  %v344_v7 = vmul.f32 %v343_v63, %v295_v53 }
  0xf6   :  { %v995_v14 = vsub.f32 %v947_v55, %v304_v4  ;;  %v997_v17 = vsub.f32 %v241_v8, %v324_v5  ;;  %v999_v13 = vsub.f32 %v251_v11, %v334_v6  ;;  %v1005_v18 = vsub.f32 %v261_v12, %v344_v7 }
  0xf7   :  { %v312_v12 = vadd.f32 %v311_v43, %v310_v22 }
  0xf8   :  { %v346_v20 = vand.u32 2147483647, %v995_v14 }
  0xf9   :  { %v313_v46 = vmul.f32 %v312_v12, %v976_v47 }
  0xfa   :  { %v347_v55 = vsel %vm283_vm1, %v346_v20, -1.0 }
  0xfb   :  { %v348_v8 = vrot.slane %v347_v55, 4  ;;  %v314_v29 = vmul.f32 %v313_v46, %v295_v53 }
  0xfd   :  { %v349_v11 = vmax.f32 %v347_v55, %v348_v8  ;;  %v315_v33 = vsub.f32 %v34_v45, %v314_v29 }
  0xff   :  { %v350_v9 = vrot.slane %v349_v11, 2 }
 0x101   :  { %v351_v23 = vmax.f32 %v349_v11, %v350_v9 }
 0x103   :  { %v352_v10 = vrot.slane %v351_v23, 1 }
 0x105   :  { %v353_v24 = vmax.f32 %v351_v23, %v352_v10 }
 0x107   :  { %vm354_vm2 = vcmp.eq.f32.partialorder %v347_v55, %v353_v24 }
 0x108   :  { %v355_v44 = vsel %vm354_vm2, %v794_v16, 127 }
 0x109   :  { %v356_v26 = vrot.slane %v355_v44, 4 }
 0x10b   :  { %vm357_vm3 = vcmp.lt.s32.totalorder %v355_v44, %v356_v26 }
 0x10c   :  { %v358_v27 = vsel %vm357_vm3, %v355_v44, %v356_v26 }
 0x10d   :  { %v359_v28 = vrot.slane %v358_v27, 2 }
 0x10f   :  { %vm360_vm8 = vcmp.lt.s32.totalorder %v358_v27, %v359_v28 }
 0x110   :  { %v361_v30 = vsel %vm360_vm8, %v358_v27, %v359_v28 }
 0x111   :  { %v362_v31 = vrot.slane %v361_v30, 1 }
 0x113   :  { %vm363_vm7 = vcmp.lt.s32.totalorder %v361_v30, %v362_v31 }
 0x114   :  { %v364_v34 = vsel %vm363_vm7, %v361_v30, %v362_v31 }
 0x115   :  { %vm1016_vm10 = vcmp.eq.s32.totalorder %v794_v16, %v364_v34 }
 0x116   :  { %v368_v36 = vsel %vm1016_vm10, %v995_v14, 0.0  ;;  %v380_v38 = vsel %vm1016_vm10, %v315_v33, 0.0  ;;  %v390_v40 = vsel %vm1016_vm10, %v997_v17, 0.0  ;;  %v400_v41 = vsel %vm1016_vm10, %v999_v13, 0.0  ;;  %vm366_vm11 = vmxor %vm1016_vm10, %vm748_vm6 }
 0x117   :  { %v369_v37 = vrot.slane %v368_v36, 4  ;;  %v410_v42 = vsel %vm1016_vm10, %v1005_v18, 0.0  ;;  %v381_v45 = vrot.slane %v380_v38, 4  ;;  %v391_v2 = vrot.slane %v390_v40, 4  ;;  %vm1060_vm13 = vmand %vm283_vm1, %vm366_vm11 }
 0x118   :  { %v401_v50 = vrot.slane %v400_v41, 4  ;;  %v411_v51 = vrot.slane %v410_v42, 4  ;;  %v379_v26 = vsel %vm1016_vm10, 0.0, %v995_v14 }
 0x119   :  { %v370_v39 = vadd.f32 %v369_v37, %v368_v36  ;;  %v382_v53 = vadd.f32 %v381_v45, %v380_v38  ;;  %v392_v54 = vadd.f32 %v391_v2, %v390_v40 }
 0x11a   :  { %v402_v56 = vadd.f32 %v401_v50, %v400_v41  ;;  %v412_v59 = vadd.f32 %v411_v51, %v410_v42 }
 0x11b   :  { %v371_v49 = vrot.slane %v370_v39, 2  ;;  %v383_v63 = vrot.slane %v382_v53, 2  ;;  %v393_v4 = vrot.slane %v392_v54, 2 }
 0x11c   :  { %v403_v57 = vrot.slane %v402_v56, 2  ;;  %v413_v5 = vrot.slane %v412_v59, 2 }
 0x11d   :  { %v372_v15 = vadd.f32 %v371_v49, %v370_v39  ;;  %v384_v6 = vadd.f32 %v383_v63, %v382_v53  ;;  %v394_v7 = vadd.f32 %v393_v4, %v392_v54 }
 0x11e   :  { %v404_v19 = vadd.f32 %v403_v57, %v402_v56  ;;  %v414_v20 = vadd.f32 %v413_v5, %v412_v59 }
 0x11f   :  { %v373_v52 = vrot.slane %v372_v15, 1  ;;  %v385_v55 = vrot.slane %v384_v6, 1  ;;  %v395_v8 = vrot.slane %v394_v7, 1 }
 0x120   :  { %v405_v21 = vrot.slane %v404_v19, 1  ;;  %v415_v11 = vrot.slane %v414_v20, 1 }
 0x121   :  { %v374_v61 = vadd.f32 %v373_v52, %v372_v15  ;;  %v386_v23 = vadd.f32 %v385_v55, %v384_v6  ;;  %v396_v43 = vadd.f32 %v395_v8, %v394_v7 }
 0x122   :  { %v406_v24 = vadd.f32 %v405_v21, %v404_v19  ;;  %v416_v12 = vadd.f32 %v415_v11, %v414_v20 }
 0x123   :  { %688 = vrcp.f32 %v374_v61 }
 0x12d   :  { %v689_v9 = vpop.eup %688 }
 0x12e   :  { %v376_v22 = vmul.f32 %v689_v9, %v374_v61 }
 0x130   :  { %v377_v10 = vsub.f32 2.0, %v376_v22 }
 0x132   :  { %v1034_v44 = vmul.f32 %v689_v9, %v377_v10 }
 0x134   :  { %v387_v46 = vmul.f32 %v386_v23, %v1034_v44  ;;  %v397_v27 = vmul.f32 %v396_v43, %v1034_v44  ;;  %v407_v28 = vmul.f32 %v406_v24, %v1034_v44  ;;  %v417_v29 = vmul.f32 %v416_v12, %v1034_v44 }
 0x136   :  { %v388_v30 = vmul.f32 %v387_v46, %v379_v26  ;;  %v398_v31 = vmul.f32 %v397_v27, %v379_v26  ;;  %v408_v34 = vmul.f32 %v407_v28, %v379_v26  ;;  %v418_v36 = vmul.f32 %v417_v29, %v379_v26 }
 0x138   :  { %v389_v37 = vsub.f32 %v315_v33, %v388_v30  ;;  %v1047_v38 = vsub.f32 %v997_v17, %v398_v31  ;;  %v1050_v14 = vsub.f32 %v999_v13, %v408_v34  ;;  %v1053_v39 = vsub.f32 %v1005_v18, %v418_v36 }
 0x13a   :  { %v420_v41 = vand.u32 2147483647, %v389_v37 }
 0x13c   :  { %v421_v17 = vsel %vm1060_vm13, %v420_v41, -1.0 }
 0x13d   :  { %v422_v33 = vrot.slane %v421_v17, 4 }
 0x13f   :  { %v423_v42 = vmax.f32 %v421_v17, %v422_v33 }
 0x141   :  { %v424_v13 = vrot.slane %v423_v42, 2 }
 0x143   :  { %v425_v49 = vmax.f32 %v423_v42, %v424_v13 }
 0x145   :  { %v426_v45 = vrot.slane %v425_v49, 1 }
 0x147   :  { %v427_v18 = vmax.f32 %v425_v49, %v426_v45 }
 0x149   :  { %vm428_vm2 = vcmp.eq.f32.partialorder %v421_v17, %v427_v18 }
 0x14a   :  { %v429_v3 = vsel %vm428_vm2, %v794_v16, 127 }
 0x14b   :  { %v430_v2 = vrot.slane %v429_v3, 4 }
 0x14d   :  { %vm431_vm3 = vcmp.lt.s32.totalorder %v429_v3, %v430_v2 }
 0x14e   :  { %v432_v0 = vsel %vm431_vm3, %v429_v3, %v430_v2 }
 0x14f   :  { %v433_v50 = vrot.slane %v432_v0, 2 }
 0x151   :  { %vm434_vm9 = vcmp.lt.s32.totalorder %v432_v0, %v433_v50 }
 0x152   :  { %v435_v51 = vsel %vm434_vm9, %v432_v0, %v433_v50 }
 0x153   :  { %v436_v15 = vrot.slane %v435_v51, 1 }
 0x155   :  { %vm437_vm15 = vcmp.lt.s32.totalorder %v435_v51, %v436_v15 }
 0x156   :  { %v438_v52 = vsel %vm437_vm15, %v435_v51, %v436_v15 }
 0x157   :  { %vm1068_vm1 = vcmp.eq.s32.totalorder %v794_v16, %v438_v52 }
 0x158   :  { %v442_v54 = vsel %vm1068_vm1, %v389_v37, 0.0  ;;  %v454_v61 = vsel %vm1068_vm1, %v1047_v38, 0.0  ;;  %v464_v63 = vsel %vm1068_vm1, %v1050_v14, 0.0  ;;  %v474_v4 = vsel %vm1068_vm1, %v1053_v39, 0.0  ;;  %vm1093_vm8 = vmxor %vm1068_vm1, %vm748_vm6 }
 0x159   :  { %v443_v56 = vrot.slane %v442_v54, 4  ;;  %v455_v5 = vrot.slane %v454_v61, 4  ;;  %v465_v6 = vrot.slane %v464_v63, 4  ;;  %v475_v7 = vrot.slane %v474_v4, 4  ;;  %vm441_vm7 = vmand %vm1060_vm13, %vm1093_vm8 }
 0x15a   :  { %v453_v41 = vsel %vm1068_vm1, 0.0, %v389_v37 }
 0x15b   :  { %v444_v59 = vadd.f32 %v443_v56, %v442_v54  ;;  %v456_v55 = vadd.f32 %v455_v5, %v454_v61  ;;  %v466_v8 = vadd.f32 %v465_v6, %v464_v63  ;;  %v476_v21 = vadd.f32 %v475_v7, %v474_v4 }
 0x15d   :  { %v445_v57 = vrot.slane %v444_v59, 2  ;;  %v457_v9 = vrot.slane %v456_v55, 2  ;;  %v467_v22 = vrot.slane %v466_v8, 2  ;;  %v477_v23 = vrot.slane %v476_v21, 2 }
 0x15f   :  { %v446_v19 = vadd.f32 %v445_v57, %v444_v59  ;;  %v458_v10 = vadd.f32 %v457_v9, %v456_v55  ;;  %v468_v43 = vadd.f32 %v467_v22, %v466_v8  ;;  %v478_v24 = vadd.f32 %v477_v23, %v476_v21 }
 0x161   :  { %v447_v20 = vrot.slane %v446_v19, 1  ;;  %v459_v12 = vrot.slane %v458_v10, 1  ;;  %v469_v26 = vrot.slane %v468_v43, 1  ;;  %v479_v46 = vrot.slane %v478_v24, 1 }
 0x163   :  { %v448_v11 = vadd.f32 %v447_v20, %v446_v19  ;;  %v460_v30 = vadd.f32 %v459_v12, %v458_v10  ;;  %v470_v31 = vadd.f32 %v469_v26, %v468_v43  ;;  %v480_v34 = vadd.f32 %v479_v46, %v478_v24 }
 0x165   :  { %690 = vrcp.f32 %v448_v11 }
 0x16f   :  { %v691_v27 = vpop.eup %690 }
 0x170   :  { %v450_v28 = vmul.f32 %v691_v27, %v448_v11 }
 0x172   :  { %v451_v29 = vsub.f32 2.0, %v450_v28 }
 0x174   :  { %v1083_v36 = vmul.f32 %v691_v27, %v451_v29 }
 0x176   :  { %v461_v17 = vmul.f32 %v460_v30, %v1083_v36  ;;  %v471_v33 = vmul.f32 %v470_v31, %v1083_v36  ;;  %v481_v42 = vmul.f32 %v480_v34, %v1083_v36 }
 0x178   :  { %v462_v49 = vmul.f32 %v461_v17, %v453_v41  ;;  %v472_v45 = vmul.f32 %v471_v33, %v453_v41  ;;  %v482_v18 = vmul.f32 %v481_v42, %v453_v41 }
 0x17a   :  { %v463_v3 = vsub.f32 %v1047_v38, %v462_v49  ;;  %v473_v37 = vsub.f32 %v1050_v14, %v472_v45  ;;  %v483_v2 = vsub.f32 %v1053_v39, %v482_v18 }
 0x17c   :  { %v484_v0 = vand.u32 2147483647, %v463_v3 }
 0x17e   :  { %v485_v50 = vsel %vm441_vm7, %v484_v0, -1.0 }
 0x17f   :  { %v486_v51 = vrot.slane %v485_v50, 4 }
 0x181   :  { %v487_v15 = vmax.f32 %v485_v50, %v486_v51 }
 0x183   :  { %v488_v52 = vrot.slane %v487_v15, 2 }
 0x185   :  { %v489_v38 = vmax.f32 %v487_v15, %v488_v52 }
 0x187   :  { %v490_v54 = vrot.slane %v489_v38, 1 }
 0x189   :  { %v491_v14 = vmax.f32 %v489_v38, %v490_v54 }
 0x18b   :  { %vm492_vm11 = vcmp.eq.f32.partialorder %v485_v50, %v491_v14 }
 0x18c   :  { %v493_v39 = vsel %vm492_vm11, %v794_v16, 127 }
 0x18d   :  { %v494_v56 = vrot.slane %v493_v39, 4 }
 0x18f   :  { %vm495_vm2 = vcmp.lt.s32.totalorder %v493_v39, %v494_v56 }
 0x190   :  { %v496_v59 = vsel %vm495_vm2, %v493_v39, %v494_v56 }
 0x191   :  { %v497_v61 = vrot.slane %v496_v59, 2 }
 0x193   :  { %vm498_vm3 = vcmp.lt.s32.totalorder %v496_v59, %v497_v61 }
 0x194   :  { %v499_v63 = vsel %vm498_vm3, %v496_v59, %v497_v61 }
 0x195   :  { %v500_v4 = vrot.slane %v499_v63, 1 }
 0x197   :  { %vm501_vm9 = vcmp.lt.s32.totalorder %v499_v63, %v500_v4 }
 0x198   :  { %v502_v57 = vsel %vm501_vm9, %v499_v63, %v500_v4 }
 0x199   :  { %vm1111_vm15 = vcmp.eq.s32.totalorder %v794_v16, %v502_v57 }
 0x19a   :  { %v506_v6 = vsel %vm1111_vm15, %v463_v3, 0.0  ;;  %v518_v20 = vsel %vm1111_vm15, %v473_v37, 0.0  ;;  %v528_v55 = vsel %vm1111_vm15, %v483_v2, 0.0  ;;  %v517_v33 = vsel %vm1111_vm15, 0.0, %v463_v3  ;;  %vm504_vm11 = vmxor %vm1111_vm15, %vm748_vm6 }
 0x19b   :  { %v507_v7 = vrot.slane %v506_v6, 4  ;;  %v519_v21 = vrot.slane %v518_v20, 4  ;;  %v529_v11 = vrot.slane %v528_v55, 4  ;;  %vm505_vm2 = vmand %vm441_vm7, %vm504_vm11 }
 0x19d   :  { %v508_v19 = vadd.f32 %v507_v7, %v506_v6  ;;  %v520_v23 = vadd.f32 %v519_v21, %v518_v20  ;;  %v530_v10 = vadd.f32 %v529_v11, %v528_v55 }
 0x19f   :  { %v509_v8 = vrot.slane %v508_v19, 2  ;;  %v521_v24 = vrot.slane %v520_v23, 2  ;;  %v531_v12 = vrot.slane %v530_v10, 2 }
 0x1a1   :  { %v510_v9 = vadd.f32 %v509_v8, %v508_v19  ;;  %v522_v26 = vadd.f32 %v521_v24, %v520_v23  ;;  %v532_v46 = vadd.f32 %v531_v12, %v530_v10 }
 0x1a3   :  { %v511_v22 = vrot.slane %v510_v9, 1  ;;  %v523_v27 = vrot.slane %v522_v26, 1  ;;  %v533_v28 = vrot.slane %v532_v46, 1 }
 0x1a5   :  { %v512_v43 = vadd.f32 %v511_v22, %v510_v9  ;;  %v524_v34 = vadd.f32 %v523_v27, %v522_v26  ;;  %v534_v41 = vadd.f32 %v533_v28, %v532_v46 }
 0x1a7   :  { %692 = vrcp.f32 %v512_v43 }
 0x1b1   :  { %v693_v29 = vpop.eup %692 }
 0x1b2   :  { %v514_v30 = vmul.f32 %v693_v29, %v512_v43 }
 0x1b4   :  { %v515_v31 = vsub.f32 2.0, %v514_v30 }
 0x1b6   :  { %v1121_v17 = vmul.f32 %v693_v29, %v515_v31 }
 0x1b8   :  { %v525_v42 = vmul.f32 %v524_v34, %v1121_v17  ;;  %v535_v49 = vmul.f32 %v534_v41, %v1121_v17 }
 0x1ba   :  { %v526_v45 = vmul.f32 %v525_v42, %v517_v33  ;;  %v536_v18 = vmul.f32 %v535_v49, %v517_v33 }
 0x1bc   :  { %v527_v0 = vsub.f32 %v473_v37, %v526_v45  ;;  %v537_v50 = vsub.f32 %v483_v2, %v536_v18 }
 0x1be   :  { %v538_v51 = vand.u32 2147483647, %v527_v0 }
 0x1c0   :  { %v539_v3 = vsel %vm505_vm2, %v538_v51, -1.0 }
 0x1c1   :  { %v540_v15 = vrot.slane %v539_v3, 4 }
 0x1c3   :  { %v541_v52 = vmax.f32 %v539_v3, %v540_v15 }
 0x1c5   :  { %v542_v38 = vrot.slane %v541_v52, 2 }
 0x1c7   :  { %v543_v54 = vmax.f32 %v541_v52, %v542_v38 }
 0x1c9   :  { %v544_v14 = vrot.slane %v543_v54, 1 }
 0x1cb   :  { %v545_v39 = vmax.f32 %v543_v54, %v544_v14 }
 0x1cd   :  { %vm546_vm3 = vcmp.eq.f32.partialorder %v539_v3, %v545_v39 }
 0x1ce   :  { %v547_v56 = vsel %vm546_vm3, %v794_v16, 127 }
 0x1cf   :  { %v548_v59 = vrot.slane %v547_v56, 4 }
 0x1d1   :  { %vm549_vm6 = vcmp.lt.s32.totalorder %v547_v56, %v548_v59 }
 0x1d2   :  { %v550_v37 = vsel %vm549_vm6, %v547_v56, %v548_v59 }
 0x1d3   :  { %v551_v2 = vrot.slane %v550_v37, 2 }
 0x1d5   :  { %vm552_vm9 = vcmp.lt.s32.totalorder %v550_v37, %v551_v2 }
 0x1d6   :  { %v553_v40 = vsel %vm552_vm9, %v550_v37, %v551_v2 }
 0x1d7   :  { %v554_v13 = vrot.slane %v553_v40, 1 }
 0x1d9   :  { %vm555_vm13 = vcmp.lt.s32.totalorder %v553_v40, %v554_v13 }
 0x1da   :  { %v556_v61 = vsel %vm555_vm13, %v553_v40, %v554_v13 }
 0x1db   :  { %vm557_vm8 = vcmp.eq.s32.totalorder %v794_v16, %v556_v61 }
 0x1dc   :  { %v558_v63 = vsel %vm557_vm8, %v527_v0, 0.0  ;;  %v569_v4 = vsel %vm557_vm8, 0.0, %v527_v0  ;;  %v570_v57 = vsel %vm557_vm8, %v537_v50, 0.0 }
 0x1dd   :  { %v559_v6 = vrot.slane %v558_v63, 4  ;;  %v571_v20 = vrot.slane %v570_v57, 4 }
 0x1df   :  { %v560_v7 = vadd.f32 %v559_v6, %v558_v63  ;;  %v572_v21 = vadd.f32 %v571_v20, %v570_v57 }
 0x1e1   :  { %v561_v19 = vrot.slane %v560_v7, 2  ;;  %v573_v9 = vrot.slane %v572_v21, 2 }
 0x1e3   :  { %v562_v55 = vadd.f32 %v561_v19, %v560_v7  ;;  %v574_v22 = vadd.f32 %v573_v9, %v572_v21 }
 0x1e5   :  { %v563_v8 = vrot.slane %v562_v55, 1  ;;  %v575_v23 = vrot.slane %v574_v22, 1 }
 0x1e7   :  { %v564_v11 = vadd.f32 %v563_v8, %v562_v55  ;;  %v576_v12 = vadd.f32 %v575_v23, %v574_v22 }
 0x1e9   :  { %694 = vrcp.f32 %v564_v11 }
 0x1f3   :  { %v695_v10 = vpop.eup %694 }
 0x1f4   :  { %v566_v43 = vmul.f32 %v695_v10, %v564_v11 }
 0x1f6   :  { %v567_v24 = vsub.f32 2.0, %v566_v43 }
 0x1f8   :  { %v1143_v26 = vmul.f32 %v695_v10, %v567_v24 }
 0x1fa   :  { %v577_v46 = vmul.f32 %v576_v12, %v1143_v26 }
 0x1fc   :  { %v578_v27 = vmul.f32 %v577_v46, %v569_v4 }
 0x1fe   :  { %v579_v28 = vsub.f32 %v537_v50, %v578_v27 }
 0x200   :  { %v580_v29 = vsel %vm798_vm5, %v579_v28, 0.0  ;;  %v588_v30 = vsel %vm852_vm12, %v579_v28, 0.0  ;;  %v596_v31 = vsel %vm912_vm4, %v579_v28, 0.0  ;;  %v604_v34 = vsel %vm953_vm14, %v579_v28, 0.0 }
 0x201   :  { %v581_v41 = vrot.slane %v580_v29, 4  ;;  %v589_v33 = vrot.slane %v588_v30, 4  ;;  %v597_v42 = vrot.slane %v596_v31, 4  ;;  %v605_v49 = vrot.slane %v604_v34, 4 }
 0x202   :  { %v612_v45 = vsel %vm1016_vm10, %v579_v28, 0.0  ;;  %v620_v25 = vsel %vm1068_vm1, %v579_v28, 0.0  ;;  %v628_v48 = vsel %vm1111_vm15, %v579_v28, 0.0  ;;  %v636_v62 = vsel %vm557_vm8, %v579_v28, 0.0 }
 0x203   :  { %v582_v18 = vadd.f32 %v581_v41, %v580_v29  ;;  %v590_v0 = vadd.f32 %v589_v33, %v588_v30  ;;  %v598_v58 = vadd.f32 %v597_v42, %v596_v31  ;;  %v606_v50 = vadd.f32 %v605_v49, %v604_v34 }
 0x204   :  { %v613_v51 = vrot.slane %v612_v45, 4  ;;  %v621_v3 = vrot.slane %v620_v25, 4  ;;  %v629_v15 = vrot.slane %v628_v48, 4  ;;  %v637_v52 = vrot.slane %v636_v62, 4 }
 0x205   :  { %vm644_vm5 = vcmask 1040384   ;;  %v583_v35 = vrot.slane %v582_v18, 2  ;;  %v591_v38 = vrot.slane %v590_v0, 2  ;;  %v599_v54 = vrot.slane %v598_v58, 2 }
 0x206   :  { %v607_v53 = vrot.slane %v606_v50, 2  ;;  %v614_v14 = vadd.f32 %v613_v51, %v612_v45  ;;  %v622_v39 = vadd.f32 %v621_v3, %v620_v25  ;;  %v630_v5 = vadd.f32 %v629_v15, %v628_v48 }
 0x207   :  { %v638_v56 = vadd.f32 %v637_v52, %v636_v62  ;;  %vm646_vm12 = vcmask 1041408   ;;  %v584_v16 = vadd.f32 %v583_v35, %v582_v18  ;;  %v592_v59 = vadd.f32 %v591_v38, %v590_v0 }
 0x208   :  { %v600_v37 = vadd.f32 %v599_v54, %v598_v58  ;;  %v608_v2 = vadd.f32 %v607_v53, %v606_v50  ;;  %v615_v40 = vrot.slane %v614_v14, 2  ;;  %v623_v13 = vrot.slane %v622_v39, 2 }
 0x209   :  { %v631_v61 = vrot.slane %v630_v5, 2  ;;  %v639_v63 = vrot.slane %v638_v56, 2  ;;  %v585_v4 = vrot.slane %v584_v16, 1  ;;  %v593_v57 = vrot.slane %v592_v59, 1 }
 0x20a   :  { %v601_v6 = vrot.slane %v600_v37, 1  ;;  %v609_v7 = vrot.slane %v608_v2, 1  ;;  %v616_v19 = vadd.f32 %v615_v40, %v614_v14  ;;  %v624_v20 = vadd.f32 %v623_v13, %v622_v39 }
 0x20b   :  { %v632_v55 = vadd.f32 %v631_v61, %v630_v5  ;;  %v640_v8 = vadd.f32 %v639_v63, %v638_v56  ;;  %v586_v21 = vadd.f32 %v585_v4, %v584_v16  ;;  %v594_v11 = vadd.f32 %v593_v57, %v592_v59 }
 0x20c   :  { %v602_v9 = vadd.f32 %v601_v6, %v600_v37  ;;  %v610_v22 = vadd.f32 %v609_v7, %v608_v2  ;;  %v617_v23 = vrot.slane %v616_v19, 1  ;;  %v625_v10 = vrot.slane %v624_v20, 1 }
 0x20d   :  { %v633_v43 = vrot.slane %v632_v55, 1  ;;  %v641_v24 = vrot.slane %v640_v8, 1  ;;  %v587_v12 = vmul.f32 %v586_v21, %v816_v60  ;;  %v595_v46 = vmul.f32 %v594_v11, %v869_v32 }
 0x20e   :  { %v603_v27 = vmul.f32 %v602_v9, %v943_v1  ;;  %v611_v28 = vmul.f32 %v610_v22, %v976_v47  ;;  %v618_v29 = vadd.f32 %v617_v23, %v616_v19  ;;  %v626_v30 = vadd.f32 %v625_v10, %v624_v20 }
 0x20f   :  { %v634_v31 = vadd.f32 %v633_v43, %v632_v55  ;;  %v642_v34 = vadd.f32 %v641_v24, %v640_v8  ;;  %v645_v41 = vsel %vm644_vm5, %v587_v12, %v595_v46  ;;  %vm648_vm4 = vcmask 1042432  }
 0x210   :  { %v619_v33 = vmul.f32 %v618_v29, %v1034_v44  ;;  %v627_v42 = vmul.f32 %v626_v30, %v1083_v36  ;;  %v647_v32 = vsel %vm646_vm12, %v645_v41, %v603_v27  ;;  %vm651_vm14 = vcmask 1044480  }
 0x211   :  { %v643_v49 = vmul.f32 %v642_v34, %v1143_v26  ;;  %v635_v60 = vmul.f32 %v634_v31, %v1121_v17  ;;  %v649_v1 = vsel %vm648_vm4, %v647_v32, %v611_v28  ;;  %vm653_vm10 = vcmask 1045504  }
 0x212   :  { %v650_v47 = vsel %vm25_vm0, %v649_v1, %v619_v33  ;;  %vm655_vm1 = vcmask 1046528  }
 0x213   :  { %v652_v45 = vsel %vm651_vm14, %v650_v47, %v627_v42 }
 0x214   :  { %v654_v25 = vsel %vm653_vm10, %v652_v45, %v635_v60 }
 0x215   :  { %v656_v44 = vsel %vm655_vm1, %v654_v25, %v643_v49 }
 0x216   :  { %657 = vst [vmem:[#allocation5] sm:$0xff] %v656_v44 }
 0x217   :  { %729 = shalt.err (!%p726_p12)
}
 0x218   :  { %s730_s24 = scalar_lea.hbm %s1186_s1, 128 }
 0x219   :  { %p731_p13 = scmp.ne.s32.totalorder %s1186_s1, %s730_s24  ;;  %p734_p0 = scmp.lt.u32.totalorder %s730_s24, %s1186_s1 }
 0x21b   :  { %p736_p1 = pnand %p734_p0, %p731_p13 }
 0x21d   :  { %739 = shalt.err (!%p736_p1)
}
 0x21e   :  { %667 = dma.vmem_to_hbm [thread:$0]  %s665_s20, 128, %s1186_s1, [#allocation4]  }
 0x21f   :  { %742 = dma.done.wait [#allocation4], 128  }
 0x220   :  { %743 = vsyncadd [#allocation4], 4294967168 }
 0x221   :  { %671 = vsyncpa [#allocation3], 1 }
 0x222   :  { %672 = vsyncpa [#allocation4], 1 }

</bundles_post_ra>
